<compile_context>
chip_gen: v6e
topology: v6e:2x2x1
jax: 0.10.0
libtpu: 0.0.40
codegen_flags: <defaults>
</compile_context>

<pallas_src>
import functools

import jax
import jax.numpy as jnp
from jax.experimental import pallas as pl
from jax.experimental.pallas import tpu as pltpu

LRELU_SLOPE = 0.2
BN_EPS = 1e-5
KW = 4      # conv kernel size
PADW = 2    # conv padding

_VMEM_LIMIT = 32 * 1024 * 1024   # safe on v5e/v6e/v7x (v7x has 64 MiB physical)


def _round_up(x, m):
    return ((x + m - 1) // m) * m


def _pick_tk(kp):
    for t in (512, 256, 128):
        if kp % t == 0:
            return t
    return 128


# --------------------------------------------------------------------------
# Pallas kernels
# --------------------------------------------------------------------------
def _gemm_bias_kernel(x_ref, w_ref, b_ref, o_ref, acc_ref, *, apply_act):
    """Tiled o = x @ w + b (+ optional LeakyReLU).  Grid (m, n, k)."""
    k = pl.program_id(2)

    @pl.when(k == 0)
    def _():
        acc_ref[...] = jnp.zeros_like(acc_ref)

    acc_ref[...] += jnp.dot(x_ref[...], w_ref[...],
                            preferred_element_type=jnp.float32)

    @pl.when(k == pl.num_programs(2) - 1)
    def _():
        y = acc_ref[...] + b_ref[...]
        if apply_act:
            y = jnp.where(y > 0, y, LRELU_SLOPE * y)
        o_ref[...] = y.astype(o_ref.dtype)


def _gemm_stats_kernel(x_ref, w_ref, y_ref, sum_ref, ssq_ref, acc_ref):
    """Tiled y = x @ w, plus per-channel sum(y) / sum(y*y) accumulated across
    M tiles.  Grid order is (n, m, k) so the (1, tn) moment blocks stay
    resident for all m/k steps of a given n block (m, k marked 'arbitrary')."""
    m = pl.program_id(1)
    k = pl.program_id(2)

    @pl.when(k == 0)
    def _():
        acc_ref[...] = jnp.zeros_like(acc_ref)

    acc_ref[...] += jnp.dot(x_ref[...], w_ref[...],
                            preferred_element_type=jnp.float32)

    @pl.when((m == 0) & (k == 0))
    def _():
        sum_ref[...] = jnp.zeros_like(sum_ref)
        ssq_ref[...] = jnp.zeros_like(ssq_ref)

    @pl.when(k == pl.num_programs(2) - 1)
    def _():
        y = acc_ref[...]
        y_ref[...] = y.astype(y_ref.dtype)
        sum_ref[...] += jnp.sum(y, axis=0, keepdims=True)
        ssq_ref[...] += jnp.sum(y * y, axis=0, keepdims=True)


def _bn_act_kernel(y_ref, sum_ref, ssq_ref, gamma_ref, beta_ref, o_ref, *,
                   count):
    """LeakyReLU(BatchNorm(y)) using precomputed per-channel moments."""
    y = y_ref[...].astype(jnp.float32)
    inv_n = 1.0 / count
    mean = sum_ref[...] * inv_n
    var = jnp.maximum(ssq_ref[...] * inv_n - mean * mean, 0.0)
    y = (y - mean) * jax.lax.rsqrt(var + BN_EPS)
    y = y * gamma_ref[...] + beta_ref[...]
    o_ref[...] = jnp.where(y > 0, y, LRELU_SLOPE * y).astype(o_ref.dtype)


# --------------------------------------------------------------------------
# Pallas-call wrappers (padding / tiling decisions)
# --------------------------------------------------------------------------
def _pad_operands(x, w):
    M, K = x.shape
    N = w.shape[1]
    Kp = _round_up(K, 128)               # lane-dense K loads
    Np = _round_up(N, 128)               # lane-dense output stores
    tm = min(_round_up(M, 16), 128)      # sublane-aligned M tile
    Mp = _round_up(M, tm)
    tn = 128
    tk = _pick_tk(Kp)
    xp = jnp.pad(x.astype(jnp.bfloat16), ((0, Mp - M), (0, Kp - K)))
    wp = jnp.pad(w.astype(jnp.bfloat16), ((0, Kp - K), (0, Np - N)))
    return xp, wp, (M, K, N, Mp, Kp, Np, tm, tk, tn)


def gemm_bias_act(x, w, b, apply_act, out_dtype=jnp.float32):
    """out = act(x @ w + b), tiled (M, N, K) GEMM with f32 accumulator."""
    xp, wp, (M, K, N, Mp, Kp, Np, tm, tk, tn) = _pad_operands(x, w)
    bp = jnp.pad(b.astype(jnp.float32), (0, Np - N)).reshape(1, Np)
    grid = (Mp // tm, Np // tn, Kp // tk)
    out = pl.pallas_call(
        functools.partial(_gemm_bias_kernel, apply_act=apply_act),
        grid=grid,
        in_specs=[
            pl.BlockSpec((tm, tk), lambda i, j, k: (i, k)),
            pl.BlockSpec((tk, tn), lambda i, j, k: (k, j)),
            pl.BlockSpec((1, tn), lambda i, j, k: (0, j)),
        ],
        out_specs=pl.BlockSpec((tm, tn), lambda i, j, k: (i, j)),
        out_shape=jax.ShapeDtypeStruct((Mp, Np), out_dtype),
        scratch_shapes=[pltpu.VMEM((tm, tn), jnp.float32)],
        compiler_params=pltpu.CompilerParams(
            dimension_semantics=("parallel", "parallel", "arbitrary"),
            vmem_limit_bytes=_VMEM_LIMIT),
        cost_estimate=pl.CostEstimate(
            flops=2 * Mp * Np * Kp,
            transcendentals=0,
            bytes_accessed=2 * Mp * Kp + 2 * Kp * Np
            + Mp * Np * jnp.dtype(out_dtype).itemsize),
    )(xp, wp, bp)
    return out[:M, :N]


def conv_bn_act(x, w, gamma, beta, out_dtype=jnp.bfloat16):
    """LeakyReLU(BatchNorm(x @ w)) with batch statistics over axis 0.

    Pass 1: tiled GEMM + per-channel moment accumulation across M tiles.
    Pass 2: tiled normalization + LeakyReLU epilogue.
    Zero-padded M rows / N cols are exactly zero, so the moments are divided
    by the real row count M and the math matches the unpadded computation.
    """
    xp, wp, (M, K, N, Mp, Kp, Np, tm, tk, tn) = _pad_operands(x, w)
    grid = (Np // tn, Mp // tm, Kp // tk)           # (n, m, k)
    y, s1, s2 = pl.pallas_call(
        _gemm_stats_kernel,
        grid=grid,
        in_specs=[
            pl.BlockSpec((tm, tk), lambda j, i, k: (i, k)),
            pl.BlockSpec((tk, tn), lambda j, i, k: (k, j)),
        ],
        out_specs=[
            pl.BlockSpec((tm, tn), lambda j, i, k: (i, j)),
            pl.BlockSpec((1, tn), lambda j, i, k: (0, j)),
            pl.BlockSpec((1, tn), lambda j, i, k: (0, j)),
        ],
        out_shape=[
            jax.ShapeDtypeStruct((Mp, Np), jnp.float32),
            jax.ShapeDtypeStruct((1, Np), jnp.float32),
            jax.ShapeDtypeStruct((1, Np), jnp.float32),
        ],
        scratch_shapes=[pltpu.VMEM((tm, tn), jnp.float32)],
        compiler_params=pltpu.CompilerParams(
            dimension_semantics=("parallel", "arbitrary", "arbitrary"),
            vmem_limit_bytes=_VMEM_LIMIT),
        cost_estimate=pl.CostEstimate(
            flops=2 * Mp * Np * Kp,
            transcendentals=0,
            bytes_accessed=2 * Mp * Kp + 2 * Kp * Np + 4 * Mp * Np + 8 * Np),
    )(xp, wp)

    gp = jnp.pad(gamma.astype(jnp.float32), (0, Np - N)).reshape(1, Np)
    bp = jnp.pad(beta.astype(jnp.float32), (0, Np - N)).reshape(1, Np)
    out = pl.pallas_call(
        functools.partial(_bn_act_kernel, count=float(M)),
        grid=(Mp // tm, Np // tn),
        in_specs=[
            pl.BlockSpec((tm, tn), lambda i, j: (i, j)),
            pl.BlockSpec((1, tn), lambda i, j: (0, j)),
            pl.BlockSpec((1, tn), lambda i, j: (0, j)),
            pl.BlockSpec((1, tn), lambda i, j: (0, j)),
            pl.BlockSpec((1, tn), lambda i, j: (0, j)),
        ],
        out_specs=pl.BlockSpec((tm, tn), lambda i, j: (i, j)),
        out_shape=jax.ShapeDtypeStruct((Mp, Np), out_dtype),
        compiler_params=pltpu.CompilerParams(
            dimension_semantics=("parallel", "parallel"),
            vmem_limit_bytes=_VMEM_LIMIT),
        cost_estimate=pl.CostEstimate(
            flops=8 * Mp * Np,
            transcendentals=Np,
            bytes_accessed=4 * Mp * Np + 16 * Np
            + Mp * Np * jnp.dtype(out_dtype).itemsize),
    )(y, s1, s2, gp, bp)
    return out[:M, :N]


# --------------------------------------------------------------------------
# Glue (im2col, parameter construction) in plain JAX
# --------------------------------------------------------------------------
def im2col(x_nhwc, stride):
    """Extract 4x4 patches with padding=2 and given stride.

    Returns ((N*Ho*Wo, KW*KW*C), (N, Ho, Wo)) with K ordered as (kh, kw, cin).
    """
    x = jnp.pad(x_nhwc, ((0, 0), (PADW, PADW), (PADW, PADW), (0, 0)))
    n, hp, wp, c = x.shape
    ho = (hp - KW) // stride + 1
    wo = (wp - KW) // stride + 1
    patches = []
    for i in range(KW):
        for j in range(KW):
            patches.append(
                x[:, i:i + stride * ho:stride, j:j + stride * wo:stride, :])
    p = jnp.stack(patches, axis=3)                # (N, Ho, Wo, KW*KW, C)
    return p.reshape(n * ho * wo, KW * KW * c), (n, ho, wo)


def build_cnn_specs(input_nc, ndf, n_layers, cnn_out_ch):
    """(cin, cout, stride, use_bias, use_bn, use_act) per conv layer."""
    specs = [(input_nc, ndf, 2, True, False, True)]
    nf_mult = 1
    for n in range(1, n_layers):
        nf_prev, nf_mult = nf_mult, min(2 ** n, 8)
        specs.append((ndf * nf_prev, ndf * nf_mult, 2, False, True, True))
    nf_prev, nf_mult = nf_mult, min(2 ** n_layers, 8)
    specs.append((ndf * nf_prev, ndf * nf_mult, 1, False, True, True))
    specs.append((ndf * nf_mult, cnn_out_ch, 1, True, False, False))
    return specs


def build_params(key, input_nc, ndf, n_layers, cnn_out_ch, dense_ch_list,
                 input_hw):
    # NOTE: conv weights are stored as (KH*KW*Cin, Cout) with K ordered
    # (kh, kw, cin); imported PyTorch weights (Cout, Cin, KH, KW) must be
    # permuted to (KH, KW, Cin, Cout) before flattening.
    specs = build_cnn_specs(input_nc, ndf, n_layers, cnn_out_ch)
    cnn = []
    hw = input_hw
    for li, (cin, cout, stride, use_bias, use_bn, use_act) in enumerate(specs):
        k_w = jax.random.fold_in(key, 2 * li)
        k_b = jax.random.fold_in(key, 2 * li + 1)
        layer = {
            "stride": stride,
            "bn": use_bn,
            "act": use_act,
            "w": 0.05 * jax.random.normal(k_w, (KW * KW * cin, cout),
                                          jnp.float32),
        }
        if use_bn:
            layer["gamma"] = jnp.ones((cout,), jnp.float32)
            layer["beta"] = jnp.zeros((cout,), jnp.float32)
        else:
            layer["b"] = (0.05 * jax.random.normal(k_b, (cout,), jnp.float32)
                          if use_bias else jnp.zeros((cout,), jnp.float32))
        cnn.append(layer)
        hw = (hw + 2 * PADW - KW) // stride + 1

    dense = None
    if dense_ch_list is not None:
        dense = []
        in_ch = hw * hw * cnn_out_ch
        fc_list = list(dense_ch_list) + [1]
        for i, fc in enumerate(fc_list):
            k_w = jax.random.fold_in(key, 1000 + 2 * i)
            k_b = jax.random.fold_in(key, 1000 + 2 * i + 1)
            dense.append({
                "w": 0.05 * jax.random.normal(k_w, (in_ch, fc), jnp.float32),
                "b": 0.05 * jax.random.normal(k_b, (fc,), jnp.float32),
                "act": i < len(fc_list) - 1,
            })
            in_ch = fc
    return {"cnn": cnn, "dense": dense}


def forward(params, x_nchw):
    """NLayerDiscriminator forward. Input NCHW (PyTorch convention)."""
    # Intermediate activations are kept in bf16 (halves HBM traffic); all
    # matmul accumulation and bias/BN/LeakyReLU epilogues run in f32.
    x = jnp.transpose(x_nchw, (0, 2, 3, 1)).astype(jnp.bfloat16)   # NHWC
    batch = x.shape[0]
    n_cnn = len(params["cnn"])
    for li, layer in enumerate(params["cnn"]):
        patches, (n, ho, wo) = im2col(x, layer["stride"])
        if layer["bn"]:
            out = conv_bn_act(patches, layer["w"], layer["gamma"],
                              layer["beta"], out_dtype=jnp.bfloat16)
        else:
            is_last = li == n_cnn - 1
            out = gemm_bias_act(
                patches, layer["w"], layer["b"], layer["act"],
                out_dtype=jnp.float32 if is_last else jnp.bfloat16)
        x = out.reshape(n, ho, wo, out.shape[-1])

    if params["dense"] is None:
        return jnp.transpose(x, (0, 3, 1, 2)).astype(jnp.float32)  # NCHW

    # Reshape(): torch .view(N, -1) flattens in (C, H, W) order.
    h = jnp.transpose(x, (0, 3, 1, 2)).reshape(batch, -1)
    for dl in params["dense"]:
        # Dense head: M = batch is padded to one sublane group (16) inside the
        # GEMM wrapper; tiny shapes are launch-overhead bound either way.
        h = gemm_bias_act(h, dl["w"], dl["b"], dl["act"],
                          out_dtype=jnp.float32)
    return h


if __name__ == "__main__":
    key = jax.random.PRNGKey(0)
    k_params, k_x = jax.random.split(key)

    # Small config: input_nc=4, ndf=8, n_layers=3, input_hw=16,
    # cnn_out_ch=4, dense_ch_list=[32]  -> output (batch, 1)
    input_nc, ndf, n_layers = 4, 8, 3
    input_hw, cnn_out_ch = 16, 4
    dense_ch_list = [32]
    batch = 2

    params = build_params(k_params, input_nc, ndf, n_layers, cnn_out_ch,
                          dense_ch_list, input_hw)
    x = jax.random.normal(k_x, (batch, input_nc, input_hw, input_hw),
                          jnp.float32)

    fwd = jax.jit(lambda inp: forward(params, inp))
    out = fwd(x)
    jax.block_until_ready(out)
    assert out.shape == (batch, 1), out.shape
    assert bool(jnp.all(jnp.isfinite(out)))
    print("KERNEL_OK")
</pallas_src>

<mosaic_0001>
module attributes {stable_mosaic.version = 11 : i64} {
  func.func @_gemm_bias_kernel(%arg0: i32, %arg1: i32, %arg2: i32, %arg3: memref<128x128xbf16, #tpu.memory_space<vmem>>, %arg4: memref<128x128xbf16, #tpu.memory_space<vmem>>, %arg5: memref<1x128xf32, #tpu.memory_space<vmem>>, %arg6: memref<128x128xbf16, #tpu.memory_space<vmem>>, %arg7: memref<128x128xf32, #tpu.memory_space<vmem>>) attributes {dimension_semantics = [#tpu.dimension_semantics<parallel>, #tpu.dimension_semantics<parallel>, #tpu.dimension_semantics<arbitrary>], iteration_bounds = array<i64: 2, 1, 1>, scalar_prefetch = 0 : i64, scratch_operands = 1 : i64, tpu.core_type = #tpu.core_type<tc>, window_params = [{transform_indices = @transform_0, window_bounds = array<i64: 128, 128>}, {transform_indices = @transform_1, window_bounds = array<i64: 128, 128>}, {transform_indices = @transform_2, window_bounds = array<i64: 1, 128>}, {transform_indices = @transform_3, window_bounds = array<i64: 128, 128>}]} {
    %c0_i32 = arith.constant 0 : i32
    %0 = arith.cmpi eq, %arg2, %c0_i32 : i32
    %1 = arith.extui %0 : i1 to i32
    %c0_i32_0 = arith.constant 0 : i32
    %2 = arith.cmpi ne, %1, %c0_i32_0 : i32
    scf.if %2 {
      %cst_10 = arith.constant 0.000000e+00 : f32
      %12 = vector.broadcast %cst_10 : f32 to vector<128x128xf32>
      %c0_11 = arith.constant 0 : index
      %c0_12 = arith.constant 0 : index
      %13 = vector.load %arg7[%c0_11, %c0_12] : memref<128x128xf32, #tpu.memory_space<vmem>>, vector<128x128xf32>
      tpu.vector_store %arg7[%c0_11, %c0_12], %12 {strides = array<i32>} : memref<128x128xf32, #tpu.memory_space<vmem>>, vector<128x128xf32>,
    } else {
    }
    %c0 = arith.constant 0 : index
    %c0_1 = arith.constant 0 : index
    %3 = vector.load %arg7[%c0, %c0_1] : memref<128x128xf32, #tpu.memory_space<vmem>>, vector<128x128xf32>
    %c0_2 = arith.constant 0 : index
    %c0_3 = arith.constant 0 : index
    %4 = vector.load %arg3[%c0_2, %c0_3] : memref<128x128xbf16, #tpu.memory_space<vmem>>, vector<128x128xbf16>
    %c0_4 = arith.constant 0 : index
    %c0_5 = arith.constant 0 : index
    %5 = vector.load %arg4[%c0_4, %c0_5] : memref<128x128xbf16, #tpu.memory_space<vmem>>, vector<128x128xbf16>
    %cst = arith.constant dense<0.000000e+00> : vector<128x128xf32>
    %6 = tpu.matmul %4, %5, %cst {dimension_numbers = #tpu.dot_dimension_numbers<[1], [0], [0], [1], [0, 0, 1, 1], [], []>} : vector<128x128xbf16>, vector<128x128xbf16>, vector<128x128xf32> -> vector<128x128xf32>
    %7 = arith.addf %3, %6 : vector<128x128xf32>
    %c0_6 = arith.constant 0 : index
    %c0_7 = arith.constant 0 : index
    %8 = vector.load %arg7[%c0_6, %c0_7] : memref<128x128xf32, #tpu.memory_space<vmem>>, vector<128x128xf32>
    tpu.vector_store %arg7[%c0_6, %c0_7], %7 {strides = array<i32>} : memref<128x128xf32, #tpu.memory_space<vmem>>, vector<128x128xf32>,
    %c0_i32_8 = arith.constant 0 : i32
    %9 = arith.cmpi eq, %arg2, %c0_i32_8 : i32
    %10 = arith.extui %9 : i1 to i32
    %c0_i32_9 = arith.constant 0 : i32
    %11 = arith.cmpi ne, %10, %c0_i32_9 : i32
    scf.if %11 {
      %c0_10 = arith.constant 0 : index
      %c0_11 = arith.constant 0 : index
      %12 = vector.load %arg7[%c0_10, %c0_11] : memref<128x128xf32, #tpu.memory_space<vmem>>, vector<128x128xf32>
      %c0_12 = arith.constant 0 : index
      %c0_13 = arith.constant 0 : index
      %13 = vector.load %arg5[%c0_12, %c0_13] : memref<1x128xf32, #tpu.memory_space<vmem>>, vector<1x128xf32>
      %14 = vector.broadcast %13 : vector<1x128xf32> to vector<128x128xf32>
      %15 = arith.addf %12, %14 : vector<128x128xf32>
      %cst_14 = arith.constant 0.000000e+00 : f32
      %16 = vector.broadcast %cst_14 : f32 to vector<128x128xf32>
      %17 = arith.cmpf ogt, %15, %16 : vector<128x128xf32>
      %cst_15 = arith.constant 2.000000e-01 : f32
      %18 = vector.broadcast %cst_15 : f32 to vector<128x128xf32>
      %19 = arith.mulf %18, %15 : vector<128x128xf32>
      %20 = arith.select %17, %15, %19 : vector<128x128xi1>, vector<128x128xf32>
      %21 = arith.truncf %20 : vector<128x128xf32> to vector<128x128xbf16>
      %c0_16 = arith.constant 0 : index
      %c0_17 = arith.constant 0 : index
      %22 = vector.load %arg6[%c0_16, %c0_17] : memref<128x128xbf16, #tpu.memory_space<vmem>>, vector<128x128xbf16>
      tpu.vector_store %arg6[%c0_16, %c0_17], %21 {strides = array<i32>} : memref<128x128xbf16, #tpu.memory_space<vmem>>, vector<128x128xbf16>,
    } else {
    }
    return
  }
  func.func @transform_0(%arg0: i32, %arg1: i32, %arg2: i32) -> (i32, i32) {
    %c0_i32 = arith.constant 0 : i32
    return %arg0, %arg2 : i32, i32
  }
  func.func @transform_1(%arg0: i32, %arg1: i32, %arg2: i32) -> (i32, i32) {
    %c0_i32 = arith.constant 0 : i32
    return %arg2, %arg1 : i32, i32
  }
  func.func @transform_2(%arg0: i32, %arg1: i32, %arg2: i32) -> (i32, i32) {
    %c0_i32 = arith.constant 0 : i32
    %c0_i32_0 = arith.constant 0 : i32
    return %c0_i32, %arg1 : i32, i32
  }
  func.func @transform_3(%arg0: i32, %arg1: i32, %arg2: i32) -> (i32, i32) {
    %c0_i32 = arith.constant 0 : i32
    return %arg0, %arg1 : i32, i32
  }
}

module attributes {stable_mosaic.version = 11 : i64} {
  func.func @_bn_act_kernel(%arg0: i32, %arg1: i32, %arg2: memref<64x128xf32, #tpu.memory_space<vmem>>, %arg3: memref<1x128xf32, #tpu.memory_space<vmem>>, %arg4: memref<1x128xf32, #tpu.memory_space<vmem>>, %arg5: memref<1x128xf32, #tpu.memory_space<vmem>>, %arg6: memref<1x128xf32, #tpu.memory_space<vmem>>, %arg7: memref<64x128xbf16, #tpu.memory_space<vmem>>) attributes {dimension_semantics = [#tpu.dimension_semantics<parallel>, #tpu.dimension_semantics<parallel>], iteration_bounds = array<i64: 1, 1>, scalar_prefetch = 0 : i64, scratch_operands = 0 : i64, tpu.core_type = #tpu.core_type<tc>, window_params = [{transform_indices = @transform_0, window_bounds = array<i64: 64, 128>}, {transform_indices = @transform_1, window_bounds = array<i64: 1, 128>}, {transform_indices = @transform_2, window_bounds = array<i64: 1, 128>}, {transform_indices = @transform_3, window_bounds = array<i64: 1, 128>}, {transform_indices = @transform_4, window_bounds = array<i64: 1, 128>}, {transform_indices = @transform_5, window_bounds = array<i64: 64, 128>}]} {
    %c0 = arith.constant 0 : index
    %c0_0 = arith.constant 0 : index
    %0 = vector.load %arg2[%c0, %c0_0] : memref<64x128xf32, #tpu.memory_space<vmem>>, vector<64x128xf32>
    %c0_1 = arith.constant 0 : index
    %c0_2 = arith.constant 0 : index
    %1 = vector.load %arg3[%c0_1, %c0_2] : memref<1x128xf32, #tpu.memory_space<vmem>>, vector<1x128xf32>
    %cst = arith.constant 2.000000e-02 : f32
    %2 = vector.broadcast %cst : f32 to vector<1x128xf32>
    %3 = arith.mulf %1, %2 : vector<1x128xf32>
    %c0_3 = arith.constant 0 : index
    %c0_4 = arith.constant 0 : index
    %4 = vector.load %arg4[%c0_3, %c0_4] : memref<1x128xf32, #tpu.memory_space<vmem>>, vector<1x128xf32>
    %cst_5 = arith.constant 2.000000e-02 : f32
    %5 = vector.broadcast %cst_5 : f32 to vector<1x128xf32>
    %6 = arith.mulf %4, %5 : vector<1x128xf32>
    %7 = arith.mulf %3, %3 : vector<1x128xf32>
    %8 = arith.subf %6, %7 : vector<1x128xf32>
    %cst_6 = arith.constant 0.000000e+00 : f32
    %9 = vector.broadcast %cst_6 : f32 to vector<1x128xf32>
    %10 = arith.maximumf %8, %9 : vector<1x128xf32>
    %11 = vector.broadcast %3 : vector<1x128xf32> to vector<64x128xf32>
    %12 = arith.subf %0, %11 : vector<64x128xf32>
    %cst_7 = arith.constant 9.99999974E-6 : f32
    %13 = vector.broadcast %cst_7 : f32 to vector<1x128xf32>
    %14 = arith.addf %10, %13 : vector<1x128xf32>
    %15 = math.rsqrt %14 : vector<1x128xf32>
    %16 = vector.broadcast %15 : vector<1x128xf32> to vector<64x128xf32>
    %17 = arith.mulf %12, %16 : vector<64x128xf32>
    %c0_8 = arith.constant 0 : index
    %c0_9 = arith.constant 0 : index
    %18 = vector.load %arg5[%c0_8, %c0_9] : memref<1x128xf32, #tpu.memory_space<vmem>>, vector<1x128xf32>
    %19 = vector.broadcast %18 : vector<1x128xf32> to vector<64x128xf32>
    %20 = arith.mulf %17, %19 : vector<64x128xf32>
    %c0_10 = arith.constant 0 : index
    %c0_11 = arith.constant 0 : index
    %21 = vector.load %arg6[%c0_10, %c0_11] : memref<1x128xf32, #tpu.memory_space<vmem>>, vector<1x128xf32>
    %22 = vector.broadcast %21 : vector<1x128xf32> to vector<64x128xf32>
    %23 = arith.addf %20, %22 : vector<64x128xf32>
    %cst_12 = arith.constant 0.000000e+00 : f32
    %24 = vector.broadcast %cst_12 : f32 to vector<64x128xf32>
    %25 = arith.cmpf ogt, %23, %24 : vector<64x128xf32>
    %cst_13 = arith.constant 2.000000e-01 : f32
    %26 = vector.broadcast %cst_13 : f32 to vector<64x128xf32>
    %27 = arith.mulf %26, %23 : vector<64x128xf32>
    %28 = arith.select %25, %23, %27 : vector<64x128xi1>, vector<64x128xf32>
    %29 = arith.truncf %28 : vector<64x128xf32> to vector<64x128xbf16>
    %c0_14 = arith.constant 0 : index
    %c0_15 = arith.constant 0 : index
    %30 = vector.load %arg7[%c0_14, %c0_15] : memref<64x128xbf16, #tpu.memory_space<vmem>>, vector<64x128xbf16>
    tpu.vector_store %arg7[%c0_14, %c0_15], %29 {strides = array<i32>} : memref<64x128xbf16, #tpu.memory_space<vmem>>, vector<64x128xbf16>,
    return
  }
  func.func @transform_0(%arg0: i32, %arg1: i32) -> (i32, i32) {
    %c0_i32 = arith.constant 0 : i32
    return %arg0, %arg1 : i32, i32
  }
  func.func @transform_1(%arg0: i32, %arg1: i32) -> (i32, i32) {
    %c0_i32 = arith.constant 0 : i32
    %c0_i32_0 = arith.constant 0 : i32
    return %c0_i32, %arg1 : i32, i32
  }
  func.func @transform_2(%arg0: i32, %arg1: i32) -> (i32, i32) {
    %c0_i32 = arith.constant 0 : i32
    %c0_i32_0 = arith.constant 0 : i32
    return %c0_i32, %arg1 : i32, i32
  }
  func.func @transform_3(%arg0: i32, %arg1: i32) -> (i32, i32) {
    %c0_i32 = arith.constant 0 : i32
    %c0_i32_0 = arith.constant 0 : i32
    return %c0_i32, %arg1 : i32, i32
  }
  func.func @transform_4(%arg0: i32, %arg1: i32) -> (i32, i32) {
    %c0_i32 = arith.constant 0 : i32
    %c0_i32_0 = arith.constant 0 : i32
    return %c0_i32, %arg1 : i32, i32
  }
  func.func @transform_5(%arg0: i32, %arg1: i32) -> (i32, i32) {
    %c0_i32 = arith.constant 0 : i32
    return %arg0, %arg1 : i32, i32
  }
}

module attributes {stable_mosaic.version = 11 : i64} {
  func.func @_gemm_stats_kernel(%arg0: i32, %arg1: i32, %arg2: i32, %arg3: memref<64x128xbf16, #tpu.memory_space<vmem>>, %arg4: memref<128x128xbf16, #tpu.memory_space<vmem>>, %arg5: memref<64x128xf32, #tpu.memory_space<vmem>>, %arg6: memref<1x128xf32, #tpu.memory_space<vmem>>, %arg7: memref<1x128xf32, #tpu.memory_space<vmem>>, %arg8: memref<64x128xf32, #tpu.memory_space<vmem>>) attributes {dimension_semantics = [#tpu.dimension_semantics<parallel>, #tpu.dimension_semantics<arbitrary>, #tpu.dimension_semantics<arbitrary>], iteration_bounds = array<i64: 1, 1, 1>, scalar_prefetch = 0 : i64, scratch_operands = 1 : i64, tpu.core_type = #tpu.core_type<tc>, window_params = [{transform_indices = @transform_0, window_bounds = array<i64: 64, 128>}, {transform_indices = @transform_1, window_bounds = array<i64: 128, 128>}, {transform_indices = @transform_2, window_bounds = array<i64: 64, 128>}, {transform_indices = @transform_3, window_bounds = array<i64: 1, 128>}, {transform_indices = @transform_4, window_bounds = array<i64: 1, 128>}]} {
    %c0_i32 = arith.constant 0 : i32
    %0 = arith.cmpi eq, %arg2, %c0_i32 : i32
    %1 = arith.extui %0 : i1 to i32
    %c0_i32_0 = arith.constant 0 : i32
    %2 = arith.cmpi ne, %1, %c0_i32_0 : i32
    scf.if %2 {
      %cst_13 = arith.constant 0.000000e+00 : f32
      %17 = vector.broadcast %cst_13 : f32 to vector<64x128xf32>
      %c0_14 = arith.constant 0 : index
      %c0_15 = arith.constant 0 : index
      %18 = vector.load %arg8[%c0_14, %c0_15] : memref<64x128xf32, #tpu.memory_space<vmem>>, vector<64x128xf32>
      tpu.vector_store %arg8[%c0_14, %c0_15], %17 {strides = array<i32>} : memref<64x128xf32, #tpu.memory_space<vmem>>, vector<64x128xf32>,
    } else {
    }
    %c0 = arith.constant 0 : index
    %c0_1 = arith.constant 0 : index
    %3 = vector.load %arg8[%c0, %c0_1] : memref<64x128xf32, #tpu.memory_space<vmem>>, vector<64x128xf32>
    %c0_2 = arith.constant 0 : index
    %c0_3 = arith.constant 0 : index
    %4 = vector.load %arg3[%c0_2, %c0_3] : memref<64x128xbf16, #tpu.memory_space<vmem>>, vector<64x128xbf16>
    %c0_4 = arith.constant 0 : index
    %c0_5 = arith.constant 0 : index
    %5 = vector.load %arg4[%c0_4, %c0_5] : memref<128x128xbf16, #tpu.memory_space<vmem>>, vector<128x128xbf16>
    %cst = arith.constant dense<0.000000e+00> : vector<64x128xf32>
    %6 = tpu.matmul %4, %5, %cst {dimension_numbers = #tpu.dot_dimension_numbers<[1], [0], [0], [1], [0, 0, 1, 1], [], []>} : vector<64x128xbf16>, vector<128x128xbf16>, vector<64x128xf32> -> vector<64x128xf32>
    %7 = arith.addf %3, %6 : vector<64x128xf32>
    %c0_6 = arith.constant 0 : index
    %c0_7 = arith.constant 0 : index
    %8 = vector.load %arg8[%c0_6, %c0_7] : memref<64x128xf32, #tpu.memory_space<vmem>>, vector<64x128xf32>
    tpu.vector_store %arg8[%c0_6, %c0_7], %7 {strides = array<i32>} : memref<64x128xf32, #tpu.memory_space<vmem>>, vector<64x128xf32>,
    %c0_i32_8 = arith.constant 0 : i32
    %9 = arith.cmpi eq, %arg1, %c0_i32_8 : i32
    %c0_i32_9 = arith.constant 0 : i32
    %10 = arith.cmpi eq, %arg2, %c0_i32_9 : i32
    %11 = arith.andi %9, %10 : i1
    %12 = arith.extui %11 : i1 to i32
    %c0_i32_10 = arith.constant 0 : i32
    %13 = arith.cmpi ne, %12, %c0_i32_10 : i32
    scf.if %13 {
      %cst_13 = arith.constant 0.000000e+00 : f32
      %17 = vector.broadcast %cst_13 : f32 to vector<1x128xf32>
      %c0_14 = arith.constant 0 : index
      %c0_15 = arith.constant 0 : index
      %18 = vector.load %arg6[%c0_14, %c0_15] : memref<1x128xf32, #tpu.memory_space<vmem>>, vector<1x128xf32>
      tpu.vector_store %arg6[%c0_14, %c0_15], %17 {strides = array<i32>} : memref<1x128xf32, #tpu.memory_space<vmem>>, vector<1x128xf32>,
      %cst_16 = arith.constant 0.000000e+00 : f32
      %19 = vector.broadcast %cst_16 : f32 to vector<1x128xf32>
      %c0_17 = arith.constant 0 : index
      %c0_18 = arith.constant 0 : index
      %20 = vector.load %arg7[%c0_17, %c0_18] : memref<1x128xf32, #tpu.memory_space<vmem>>, vector<1x128xf32>
      tpu.vector_store %arg7[%c0_17, %c0_18], %19 {strides = array<i32>} : memref<1x128xf32, #tpu.memory_space<vmem>>, vector<1x128xf32>,
    } else {
    }
    %c0_i32_11 = arith.constant 0 : i32
    %14 = arith.cmpi eq, %arg2, %c0_i32_11 : i32
    %15 = arith.extui %14 : i1 to i32
    %c0_i32_12 = arith.constant 0 : i32
    %16 = arith.cmpi ne, %15, %c0_i32_12 : i32
    scf.if %16 {
      %c0_13 = arith.constant 0 : index
      %c0_14 = arith.constant 0 : index
      %17 = vector.load %arg8[%c0_13, %c0_14] : memref<64x128xf32, #tpu.memory_space<vmem>>, vector<64x128xf32>
      %c0_15 = arith.constant 0 : index
      %c0_16 = arith.constant 0 : index
      %18 = vector.load %arg5[%c0_15, %c0_16] : memref<64x128xf32, #tpu.memory_space<vmem>>, vector<64x128xf32>
      tpu.vector_store %arg5[%c0_15, %c0_16], %17 {strides = array<i32>} : memref<64x128xf32, #tpu.memory_space<vmem>>, vector<64x128xf32>,
      %c0_17 = arith.constant 0 : index
      %c0_18 = arith.constant 0 : index
      %19 = vector.load %arg6[%c0_17, %c0_18] : memref<1x128xf32, #tpu.memory_space<vmem>>, vector<1x128xf32>
      %cst_19 = arith.constant dense<0.000000e+00> : vector<128xf32>
      %20 = vector.multi_reduction <add>, %17, %cst_19 [0] : vector<64x128xf32> to vector<128xf32>
      %21 = vector.shape_cast %20 : vector<128xf32> to vector<1x128xf32>
      %22 = arith.addf %19, %21 : vector<1x128xf32>
      %c0_20 = arith.constant 0 : index
      %c0_21 = arith.constant 0 : index
      %23 = vector.load %arg6[%c0_20, %c0_21] : memref<1x128xf32, #tpu.memory_space<vmem>>, vector<1x128xf32>
      tpu.vector_store %arg6[%c0_20, %c0_21], %22 {strides = array<i32>} : memref<1x128xf32, #tpu.memory_space<vmem>>, vector<1x128xf32>,
      %c0_22 = arith.constant 0 : index
      %c0_23 = arith.constant 0 : index
      %24 = vector.load %arg7[%c0_22, %c0_23] : memref<1x128xf32, #tpu.memory_space<vmem>>, vector<1x128xf32>
      %25 = arith.mulf %17, %17 : vector<64x128xf32>
      %cst_24 = arith.constant dense<0.000000e+00> : vector<128xf32>
      %26 = vector.multi_reduction <add>, %25, %cst_24 [0] : vector<64x128xf32> to vector<128xf32>
      %27 = vector.shape_cast %26 : vector<128xf32> to vector<1x128xf32>
      %28 = arith.addf %24, %27 : vector<1x128xf32>
      %c0_25 = arith.constant 0 : index
      %c0_26 = arith.constant 0 : index
      %29 = vector.load %arg7[%c0_25, %c0_26] : memref<1x128xf32, #tpu.memory_space<vmem>>, vector<1x128xf32>
      tpu.vector_store %arg7[%c0_25, %c0_26], %28 {strides = array<i32>} : memref<1x128xf32, #tpu.memory_space<vmem>>, vector<1x128xf32>,
    } else {
    }
    return
  }
  func.func @transform_0(%arg0: i32, %arg1: i32, %arg2: i32) -> (i32, i32) {
    %c0_i32 = arith.constant 0 : i32
    return %arg1, %arg2 : i32, i32
  }
  func.func @transform_1(%arg0: i32, %arg1: i32, %arg2: i32) -> (i32, i32) {
    %c0_i32 = arith.constant 0 : i32
    return %arg2, %arg0 : i32, i32
  }
  func.func @transform_2(%arg0: i32, %arg1: i32, %arg2: i32) -> (i32, i32) {
    %c0_i32 = arith.constant 0 : i32
    return %arg1, %arg0 : i32, i32
  }
  func.func @transform_3(%arg0: i32, %arg1: i32, %arg2: i32) -> (i32, i32) {
    %c0_i32 = arith.constant 0 : i32
    %c0_i32_0 = arith.constant 0 : i32
    return %c0_i32, %arg0 : i32, i32
  }
  func.func @transform_4(%arg0: i32, %arg1: i32, %arg2: i32) -> (i32, i32) {
    %c0_i32 = arith.constant 0 : i32
    %c0_i32_0 = arith.constant 0 : i32
    return %c0_i32, %arg0 : i32, i32
  }
}

module attributes {stable_mosaic.version = 11 : i64} {
  func.func @_gemm_stats_kernel(%arg0: i32, %arg1: i32, %arg2: i32, %arg3: memref<32x256xbf16, #tpu.memory_space<vmem>>, %arg4: memref<256x128xbf16, #tpu.memory_space<vmem>>, %arg5: memref<32x128xf32, #tpu.memory_space<vmem>>, %arg6: memref<1x128xf32, #tpu.memory_space<vmem>>, %arg7: memref<1x128xf32, #tpu.memory_space<vmem>>, %arg8: memref<32x128xf32, #tpu.memory_space<vmem>>) attributes {dimension_semantics = [#tpu.dimension_semantics<parallel>, #tpu.dimension_semantics<arbitrary>, #tpu.dimension_semantics<arbitrary>], iteration_bounds = array<i64: 1, 1, 1>, scalar_prefetch = 0 : i64, scratch_operands = 1 : i64, tpu.core_type = #tpu.core_type<tc>, window_params = [{transform_indices = @transform_0, window_bounds = array<i64: 32, 256>}, {transform_indices = @transform_1, window_bounds = array<i64: 256, 128>}, {transform_indices = @transform_2, window_bounds = array<i64: 32, 128>}, {transform_indices = @transform_3, window_bounds = array<i64: 1, 128>}, {transform_indices = @transform_4, window_bounds = array<i64: 1, 128>}]} {
    %c0_i32 = arith.constant 0 : i32
    %0 = arith.cmpi eq, %arg2, %c0_i32 : i32
    %1 = arith.extui %0 : i1 to i32
    %c0_i32_0 = arith.constant 0 : i32
    %2 = arith.cmpi ne, %1, %c0_i32_0 : i32
    scf.if %2 {
      %cst_13 = arith.constant 0.000000e+00 : f32
      %17 = vector.broadcast %cst_13 : f32 to vector<32x128xf32>
      %c0_14 = arith.constant 0 : index
      %c0_15 = arith.constant 0 : index
      %18 = vector.load %arg8[%c0_14, %c0_15] : memref<32x128xf32, #tpu.memory_space<vmem>>, vector<32x128xf32>
      tpu.vector_store %arg8[%c0_14, %c0_15], %17 {strides = array<i32>} : memref<32x128xf32, #tpu.memory_space<vmem>>, vector<32x128xf32>,
    } else {
    }
    %c0 = arith.constant 0 : index
    %c0_1 = arith.constant 0 : index
    %3 = vector.load %arg8[%c0, %c0_1] : memref<32x128xf32, #tpu.memory_space<vmem>>, vector<32x128xf32>
    %c0_2 = arith.constant 0 : index
    %c0_3 = arith.constant 0 : index
    %4 = vector.load %arg3[%c0_2, %c0_3] : memref<32x256xbf16, #tpu.memory_space<vmem>>, vector<32x256xbf16>
    %c0_4 = arith.constant 0 : index
    %c0_5 = arith.constant 0 : index
    %5 = vector.load %arg4[%c0_4, %c0_5] : memref<256x128xbf16, #tpu.memory_space<vmem>>, vector<256x128xbf16>
    %cst = arith.constant dense<0.000000e+00> : vector<32x128xf32>
    %6 = tpu.matmul %4, %5, %cst {dimension_numbers = #tpu.dot_dimension_numbers<[1], [0], [0], [1], [0, 0, 1, 1], [], []>} : vector<32x256xbf16>, vector<256x128xbf16>, vector<32x128xf32> -> vector<32x128xf32>
    %7 = arith.addf %3, %6 : vector<32x128xf32>
    %c0_6 = arith.constant 0 : index
    %c0_7 = arith.constant 0 : index
    %8 = vector.load %arg8[%c0_6, %c0_7] : memref<32x128xf32, #tpu.memory_space<vmem>>, vector<32x128xf32>
    tpu.vector_store %arg8[%c0_6, %c0_7], %7 {strides = array<i32>} : memref<32x128xf32, #tpu.memory_space<vmem>>, vector<32x128xf32>,
    %c0_i32_8 = arith.constant 0 : i32
    %9 = arith.cmpi eq, %arg1, %c0_i32_8 : i32
    %c0_i32_9 = arith.constant 0 : i32
    %10 = arith.cmpi eq, %arg2, %c0_i32_9 : i32
    %11 = arith.andi %9, %10 : i1
    %12 = arith.extui %11 : i1 to i32
    %c0_i32_10 = arith.constant 0 : i32
    %13 = arith.cmpi ne, %12, %c0_i32_10 : i32
    scf.if %13 {
      %cst_13 = arith.constant 0.000000e+00 : f32
      %17 = vector.broadcast %cst_13 : f32 to vector<1x128xf32>
      %c0_14 = arith.constant 0 : index
      %c0_15 = arith.constant 0 : index
      %18 = vector.load %arg6[%c0_14, %c0_15] : memref<1x128xf32, #tpu.memory_space<vmem>>, vector<1x128xf32>
      tpu.vector_store %arg6[%c0_14, %c0_15], %17 {strides = array<i32>} : memref<1x128xf32, #tpu.memory_space<vmem>>, vector<1x128xf32>,
      %cst_16 = arith.constant 0.000000e+00 : f32
      %19 = vector.broadcast %cst_16 : f32 to vector<1x128xf32>
      %c0_17 = arith.constant 0 : index
      %c0_18 = arith.constant 0 : index
      %20 = vector.load %arg7[%c0_17, %c0_18] : memref<1x128xf32, #tpu.memory_space<vmem>>, vector<1x128xf32>
      tpu.vector_store %arg7[%c0_17, %c0_18], %19 {strides = array<i32>} : memref<1x128xf32, #tpu.memory_space<vmem>>, vector<1x128xf32>,
    } else {
    }
    %c0_i32_11 = arith.constant 0 : i32
    %14 = arith.cmpi eq, %arg2, %c0_i32_11 : i32
    %15 = arith.extui %14 : i1 to i32
    %c0_i32_12 = arith.constant 0 : i32
    %16 = arith.cmpi ne, %15, %c0_i32_12 : i32
    scf.if %16 {
      %c0_13 = arith.constant 0 : index
      %c0_14 = arith.constant 0 : index
      %17 = vector.load %arg8[%c0_13, %c0_14] : memref<32x128xf32, #tpu.memory_space<vmem>>, vector<32x128xf32>
      %c0_15 = arith.constant 0 : index
      %c0_16 = arith.constant 0 : index
      %18 = vector.load %arg5[%c0_15, %c0_16] : memref<32x128xf32, #tpu.memory_space<vmem>>, vector<32x128xf32>
      tpu.vector_store %arg5[%c0_15, %c0_16], %17 {strides = array<i32>} : memref<32x128xf32, #tpu.memory_space<vmem>>, vector<32x128xf32>,
      %c0_17 = arith.constant 0 : index
      %c0_18 = arith.constant 0 : index
      %19 = vector.load %arg6[%c0_17, %c0_18] : memref<1x128xf32, #tpu.memory_space<vmem>>, vector<1x128xf32>
      %cst_19 = arith.constant dense<0.000000e+00> : vector<128xf32>
      %20 = vector.multi_reduction <add>, %17, %cst_19 [0] : vector<32x128xf32> to vector<128xf32>
      %21 = vector.shape_cast %20 : vector<128xf32> to vector<1x128xf32>
      %22 = arith.addf %19, %21 : vector<1x128xf32>
      %c0_20 = arith.constant 0 : index
      %c0_21 = arith.constant 0 : index
      %23 = vector.load %arg6[%c0_20, %c0_21] : memref<1x128xf32, #tpu.memory_space<vmem>>, vector<1x128xf32>
      tpu.vector_store %arg6[%c0_20, %c0_21], %22 {strides = array<i32>} : memref<1x128xf32, #tpu.memory_space<vmem>>, vector<1x128xf32>,
      %c0_22 = arith.constant 0 : index
      %c0_23 = arith.constant 0 : index
      %24 = vector.load %arg7[%c0_22, %c0_23] : memref<1x128xf32, #tpu.memory_space<vmem>>, vector<1x128xf32>
      %25 = arith.mulf %17, %17 : vector<32x128xf32>
      %cst_24 = arith.constant dense<0.000000e+00> : vector<128xf32>
      %26 = vector.multi_reduction <add>, %25, %cst_24 [0] : vector<32x128xf32> to vector<128xf32>
      %27 = vector.shape_cast %26 : vector<128xf32> to vector<1x128xf32>
      %28 = arith.addf %24, %27 : vector<1x128xf32>
      %c0_25 = arith.constant 0 : index
      %c0_26 = arith.constant 0 : index
      %29 = vector.load %arg7[%c0_25, %c0_26] : memref<1x128xf32, #tpu.memory_space<vmem>>, vector<1x128xf32>
      tpu.vector_store %arg7[%c0_25, %c0_26], %28 {strides = array<i32>} : memref<1x128xf32, #tpu.memory_space<vmem>>, vector<1x128xf32>,
    } else {
    }
    return
  }
  func.func @transform_0(%arg0: i32, %arg1: i32, %arg2: i32) -> (i32, i32) {
    %c0_i32 = arith.constant 0 : i32
    return %arg1, %arg2 : i32, i32
  }
  func.func @transform_1(%arg0: i32, %arg1: i32, %arg2: i32) -> (i32, i32) {
    %c0_i32 = arith.constant 0 : i32
    return %arg2, %arg0 : i32, i32
  }
  func.func @transform_2(%arg0: i32, %arg1: i32, %arg2: i32) -> (i32, i32) {
    %c0_i32 = arith.constant 0 : i32
    return %arg1, %arg0 : i32, i32
  }
  func.func @transform_3(%arg0: i32, %arg1: i32, %arg2: i32) -> (i32, i32) {
    %c0_i32 = arith.constant 0 : i32
    %c0_i32_0 = arith.constant 0 : i32
    return %c0_i32, %arg0 : i32, i32
  }
  func.func @transform_4(%arg0: i32, %arg1: i32, %arg2: i32) -> (i32, i32) {
    %c0_i32 = arith.constant 0 : i32
    %c0_i32_0 = arith.constant 0 : i32
    return %c0_i32, %arg0 : i32, i32
  }
}

module attributes {stable_mosaic.version = 11 : i64} {
  func.func @_bn_act_kernel(%arg0: i32, %arg1: i32, %arg2: memref<32x128xf32, #tpu.memory_space<vmem>>, %arg3: memref<1x128xf32, #tpu.memory_space<vmem>>, %arg4: memref<1x128xf32, #tpu.memory_space<vmem>>, %arg5: memref<1x128xf32, #tpu.memory_space<vmem>>, %arg6: memref<1x128xf32, #tpu.memory_space<vmem>>, %arg7: memref<32x128xbf16, #tpu.memory_space<vmem>>) attributes {dimension_semantics = [#tpu.dimension_semantics<parallel>, #tpu.dimension_semantics<parallel>], iteration_bounds = array<i64: 1, 1>, scalar_prefetch = 0 : i64, scratch_operands = 0 : i64, tpu.core_type = #tpu.core_type<tc>, window_params = [{transform_indices = @transform_0, window_bounds = array<i64: 32, 128>}, {transform_indices = @transform_1, window_bounds = array<i64: 1, 128>}, {transform_indices = @transform_2, window_bounds = array<i64: 1, 128>}, {transform_indices = @transform_3, window_bounds = array<i64: 1, 128>}, {transform_indices = @transform_4, window_bounds = array<i64: 1, 128>}, {transform_indices = @transform_5, window_bounds = array<i64: 32, 128>}]} {
    %c0 = arith.constant 0 : index
    %c0_0 = arith.constant 0 : index
    %0 = vector.load %arg2[%c0, %c0_0] : memref<32x128xf32, #tpu.memory_space<vmem>>, vector<32x128xf32>
    %c0_1 = arith.constant 0 : index
    %c0_2 = arith.constant 0 : index
    %1 = vector.load %arg3[%c0_1, %c0_2] : memref<1x128xf32, #tpu.memory_space<vmem>>, vector<1x128xf32>
    %cst = arith.constant 0.055555556 : f32
    %2 = vector.broadcast %cst : f32 to vector<1x128xf32>
    %3 = arith.mulf %1, %2 : vector<1x128xf32>
    %c0_3 = arith.constant 0 : index
    %c0_4 = arith.constant 0 : index
    %4 = vector.load %arg4[%c0_3, %c0_4] : memref<1x128xf32, #tpu.memory_space<vmem>>, vector<1x128xf32>
    %cst_5 = arith.constant 0.055555556 : f32
    %5 = vector.broadcast %cst_5 : f32 to vector<1x128xf32>
    %6 = arith.mulf %4, %5 : vector<1x128xf32>
    %7 = arith.mulf %3, %3 : vector<1x128xf32>
    %8 = arith.subf %6, %7 : vector<1x128xf32>
    %cst_6 = arith.constant 0.000000e+00 : f32
    %9 = vector.broadcast %cst_6 : f32 to vector<1x128xf32>
    %10 = arith.maximumf %8, %9 : vector<1x128xf32>
    %11 = vector.broadcast %3 : vector<1x128xf32> to vector<32x128xf32>
    %12 = arith.subf %0, %11 : vector<32x128xf32>
    %cst_7 = arith.constant 9.99999974E-6 : f32
    %13 = vector.broadcast %cst_7 : f32 to vector<1x128xf32>
    %14 = arith.addf %10, %13 : vector<1x128xf32>
    %15 = math.rsqrt %14 : vector<1x128xf32>
    %16 = vector.broadcast %15 : vector<1x128xf32> to vector<32x128xf32>
    %17 = arith.mulf %12, %16 : vector<32x128xf32>
    %c0_8 = arith.constant 0 : index
    %c0_9 = arith.constant 0 : index
    %18 = vector.load %arg5[%c0_8, %c0_9] : memref<1x128xf32, #tpu.memory_space<vmem>>, vector<1x128xf32>
    %19 = vector.broadcast %18 : vector<1x128xf32> to vector<32x128xf32>
    %20 = arith.mulf %17, %19 : vector<32x128xf32>
    %c0_10 = arith.constant 0 : index
    %c0_11 = arith.constant 0 : index
    %21 = vector.load %arg6[%c0_10, %c0_11] : memref<1x128xf32, #tpu.memory_space<vmem>>, vector<1x128xf32>
    %22 = vector.broadcast %21 : vector<1x128xf32> to vector<32x128xf32>
    %23 = arith.addf %20, %22 : vector<32x128xf32>
    %cst_12 = arith.constant 0.000000e+00 : f32
    %24 = vector.broadcast %cst_12 : f32 to vector<32x128xf32>
    %25 = arith.cmpf ogt, %23, %24 : vector<32x128xf32>
    %cst_13 = arith.constant 2.000000e-01 : f32
    %26 = vector.broadcast %cst_13 : f32 to vector<32x128xf32>
    %27 = arith.mulf %26, %23 : vector<32x128xf32>
    %28 = arith.select %25, %23, %27 : vector<32x128xi1>, vector<32x128xf32>
    %29 = arith.truncf %28 : vector<32x128xf32> to vector<32x128xbf16>
    %c0_14 = arith.constant 0 : index
    %c0_15 = arith.constant 0 : index
    %30 = vector.load %arg7[%c0_14, %c0_15] : memref<32x128xbf16, #tpu.memory_space<vmem>>, vector<32x128xbf16>
    tpu.vector_store %arg7[%c0_14, %c0_15], %29 {strides = array<i32>} : memref<32x128xbf16, #tpu.memory_space<vmem>>, vector<32x128xbf16>,
    return
  }
  func.func @transform_0(%arg0: i32, %arg1: i32) -> (i32, i32) {
    %c0_i32 = arith.constant 0 : i32
    return %arg0, %arg1 : i32, i32
  }
  func.func @transform_1(%arg0: i32, %arg1: i32) -> (i32, i32) {
    %c0_i32 = arith.constant 0 : i32
    %c0_i32_0 = arith.constant 0 : i32
    return %c0_i32, %arg1 : i32, i32
  }
  func.func @transform_2(%arg0: i32, %arg1: i32) -> (i32, i32) {
    %c0_i32 = arith.constant 0 : i32
    %c0_i32_0 = arith.constant 0 : i32
    return %c0_i32, %arg1 : i32, i32
  }
  func.func @transform_3(%arg0: i32, %arg1: i32) -> (i32, i32) {
    %c0_i32 = arith.constant 0 : i32
    %c0_i32_0 = arith.constant 0 : i32
    return %c0_i32, %arg1 : i32, i32
  }
  func.func @transform_4(%arg0: i32, %arg1: i32) -> (i32, i32) {
    %c0_i32 = arith.constant 0 : i32
    %c0_i32_0 = arith.constant 0 : i32
    return %c0_i32, %arg1 : i32, i32
  }
  func.func @transform_5(%arg0: i32, %arg1: i32) -> (i32, i32) {
    %c0_i32 = arith.constant 0 : i32
    return %arg0, %arg1 : i32, i32
  }
}

module attributes {stable_mosaic.version = 11 : i64} {
  func.func @_gemm_stats_kernel(%arg0: i32, %arg1: i32, %arg2: i32, %arg3: memref<32x512xbf16, #tpu.memory_space<vmem>>, %arg4: memref<512x128xbf16, #tpu.memory_space<vmem>>, %arg5: memref<32x128xf32, #tpu.memory_space<vmem>>, %arg6: memref<1x128xf32, #tpu.memory_space<vmem>>, %arg7: memref<1x128xf32, #tpu.memory_space<vmem>>, %arg8: memref<32x128xf32, #tpu.memory_space<vmem>>) attributes {dimension_semantics = [#tpu.dimension_semantics<parallel>, #tpu.dimension_semantics<arbitrary>, #tpu.dimension_semantics<arbitrary>], iteration_bounds = array<i64: 1, 1, 1>, scalar_prefetch = 0 : i64, scratch_operands = 1 : i64, tpu.core_type = #tpu.core_type<tc>, window_params = [{transform_indices = @transform_0, window_bounds = array<i64: 32, 512>}, {transform_indices = @transform_1, window_bounds = array<i64: 512, 128>}, {transform_indices = @transform_2, window_bounds = array<i64: 32, 128>}, {transform_indices = @transform_3, window_bounds = array<i64: 1, 128>}, {transform_indices = @transform_4, window_bounds = array<i64: 1, 128>}]} {
    %c0_i32 = arith.constant 0 : i32
    %0 = arith.cmpi eq, %arg2, %c0_i32 : i32
    %1 = arith.extui %0 : i1 to i32
    %c0_i32_0 = arith.constant 0 : i32
    %2 = arith.cmpi ne, %1, %c0_i32_0 : i32
    scf.if %2 {
      %cst_13 = arith.constant 0.000000e+00 : f32
      %17 = vector.broadcast %cst_13 : f32 to vector<32x128xf32>
      %c0_14 = arith.constant 0 : index
      %c0_15 = arith.constant 0 : index
      %18 = vector.load %arg8[%c0_14, %c0_15] : memref<32x128xf32, #tpu.memory_space<vmem>>, vector<32x128xf32>
      tpu.vector_store %arg8[%c0_14, %c0_15], %17 {strides = array<i32>} : memref<32x128xf32, #tpu.memory_space<vmem>>, vector<32x128xf32>,
    } else {
    }
    %c0 = arith.constant 0 : index
    %c0_1 = arith.constant 0 : index
    %3 = vector.load %arg8[%c0, %c0_1] : memref<32x128xf32, #tpu.memory_space<vmem>>, vector<32x128xf32>
    %c0_2 = arith.constant 0 : index
    %c0_3 = arith.constant 0 : index
    %4 = vector.load %arg3[%c0_2, %c0_3] : memref<32x512xbf16, #tpu.memory_space<vmem>>, vector<32x512xbf16>
    %c0_4 = arith.constant 0 : index
    %c0_5 = arith.constant 0 : index
    %5 = vector.load %arg4[%c0_4, %c0_5] : memref<512x128xbf16, #tpu.memory_space<vmem>>, vector<512x128xbf16>
    %cst = arith.constant dense<0.000000e+00> : vector<32x128xf32>
    %6 = tpu.matmul %4, %5, %cst {dimension_numbers = #tpu.dot_dimension_numbers<[1], [0], [0], [1], [0, 0, 1, 1], [], []>} : vector<32x512xbf16>, vector<512x128xbf16>, vector<32x128xf32> -> vector<32x128xf32>
    %7 = arith.addf %3, %6 : vector<32x128xf32>
    %c0_6 = arith.constant 0 : index
    %c0_7 = arith.constant 0 : index
    %8 = vector.load %arg8[%c0_6, %c0_7] : memref<32x128xf32, #tpu.memory_space<vmem>>, vector<32x128xf32>
    tpu.vector_store %arg8[%c0_6, %c0_7], %7 {strides = array<i32>} : memref<32x128xf32, #tpu.memory_space<vmem>>, vector<32x128xf32>,
    %c0_i32_8 = arith.constant 0 : i32
    %9 = arith.cmpi eq, %arg1, %c0_i32_8 : i32
    %c0_i32_9 = arith.constant 0 : i32
    %10 = arith.cmpi eq, %arg2, %c0_i32_9 : i32
    %11 = arith.andi %9, %10 : i1
    %12 = arith.extui %11 : i1 to i32
    %c0_i32_10 = arith.constant 0 : i32
    %13 = arith.cmpi ne, %12, %c0_i32_10 : i32
    scf.if %13 {
      %cst_13 = arith.constant 0.000000e+00 : f32
      %17 = vector.broadcast %cst_13 : f32 to vector<1x128xf32>
      %c0_14 = arith.constant 0 : index
      %c0_15 = arith.constant 0 : index
      %18 = vector.load %arg6[%c0_14, %c0_15] : memref<1x128xf32, #tpu.memory_space<vmem>>, vector<1x128xf32>
      tpu.vector_store %arg6[%c0_14, %c0_15], %17 {strides = array<i32>} : memref<1x128xf32, #tpu.memory_space<vmem>>, vector<1x128xf32>,
      %cst_16 = arith.constant 0.000000e+00 : f32
      %19 = vector.broadcast %cst_16 : f32 to vector<1x128xf32>
      %c0_17 = arith.constant 0 : index
      %c0_18 = arith.constant 0 : index
      %20 = vector.load %arg7[%c0_17, %c0_18] : memref<1x128xf32, #tpu.memory_space<vmem>>, vector<1x128xf32>
      tpu.vector_store %arg7[%c0_17, %c0_18], %19 {strides = array<i32>} : memref<1x128xf32, #tpu.memory_space<vmem>>, vector<1x128xf32>,
    } else {
    }
    %c0_i32_11 = arith.constant 0 : i32
    %14 = arith.cmpi eq, %arg2, %c0_i32_11 : i32
    %15 = arith.extui %14 : i1 to i32
    %c0_i32_12 = arith.constant 0 : i32
    %16 = arith.cmpi ne, %15, %c0_i32_12 : i32
    scf.if %16 {
      %c0_13 = arith.constant 0 : index
      %c0_14 = arith.constant 0 : index
      %17 = vector.load %arg8[%c0_13, %c0_14] : memref<32x128xf32, #tpu.memory_space<vmem>>, vector<32x128xf32>
      %c0_15 = arith.constant 0 : index
      %c0_16 = arith.constant 0 : index
      %18 = vector.load %arg5[%c0_15, %c0_16] : memref<32x128xf32, #tpu.memory_space<vmem>>, vector<32x128xf32>
      tpu.vector_store %arg5[%c0_15, %c0_16], %17 {strides = array<i32>} : memref<32x128xf32, #tpu.memory_space<vmem>>, vector<32x128xf32>,
      %c0_17 = arith.constant 0 : index
      %c0_18 = arith.constant 0 : index
      %19 = vector.load %arg6[%c0_17, %c0_18] : memref<1x128xf32, #tpu.memory_space<vmem>>, vector<1x128xf32>
      %cst_19 = arith.constant dense<0.000000e+00> : vector<128xf32>
      %20 = vector.multi_reduction <add>, %17, %cst_19 [0] : vector<32x128xf32> to vector<128xf32>
      %21 = vector.shape_cast %20 : vector<128xf32> to vector<1x128xf32>
      %22 = arith.addf %19, %21 : vector<1x128xf32>
      %c0_20 = arith.constant 0 : index
      %c0_21 = arith.constant 0 : index
      %23 = vector.load %arg6[%c0_20, %c0_21] : memref<1x128xf32, #tpu.memory_space<vmem>>, vector<1x128xf32>
      tpu.vector_store %arg6[%c0_20, %c0_21], %22 {strides = array<i32>} : memref<1x128xf32, #tpu.memory_space<vmem>>, vector<1x128xf32>,
      %c0_22 = arith.constant 0 : index
      %c0_23 = arith.constant 0 : index
      %24 = vector.load %arg7[%c0_22, %c0_23] : memref<1x128xf32, #tpu.memory_space<vmem>>, vector<1x128xf32>
      %25 = arith.mulf %17, %17 : vector<32x128xf32>
      %cst_24 = arith.constant dense<0.000000e+00> : vector<128xf32>
      %26 = vector.multi_reduction <add>, %25, %cst_24 [0] : vector<32x128xf32> to vector<128xf32>
      %27 = vector.shape_cast %26 : vector<128xf32> to vector<1x128xf32>
      %28 = arith.addf %24, %27 : vector<1x128xf32>
      %c0_25 = arith.constant 0 : index
      %c0_26 = arith.constant 0 : index
      %29 = vector.load %arg7[%c0_25, %c0_26] : memref<1x128xf32, #tpu.memory_space<vmem>>, vector<1x128xf32>
      tpu.vector_store %arg7[%c0_25, %c0_26], %28 {strides = array<i32>} : memref<1x128xf32, #tpu.memory_space<vmem>>, vector<1x128xf32>,
    } else {
    }
    return
  }
  func.func @transform_0(%arg0: i32, %arg1: i32, %arg2: i32) -> (i32, i32) {
    %c0_i32 = arith.constant 0 : i32
    return %arg1, %arg2 : i32, i32
  }
  func.func @transform_1(%arg0: i32, %arg1: i32, %arg2: i32) -> (i32, i32) {
    %c0_i32 = arith.constant 0 : i32
    return %arg2, %arg0 : i32, i32
  }
  func.func @transform_2(%arg0: i32, %arg1: i32, %arg2: i32) -> (i32, i32) {
    %c0_i32 = arith.constant 0 : i32
    return %arg1, %arg0 : i32, i32
  }
  func.func @transform_3(%arg0: i32, %arg1: i32, %arg2: i32) -> (i32, i32) {
    %c0_i32 = arith.constant 0 : i32
    %c0_i32_0 = arith.constant 0 : i32
    return %c0_i32, %arg0 : i32, i32
  }
  func.func @transform_4(%arg0: i32, %arg1: i32, %arg2: i32) -> (i32, i32) {
    %c0_i32 = arith.constant 0 : i32
    %c0_i32_0 = arith.constant 0 : i32
    return %c0_i32, %arg0 : i32, i32
  }
}

module attributes {stable_mosaic.version = 11 : i64} {
  func.func @_bn_act_kernel(%arg0: i32, %arg1: i32, %arg2: memref<32x128xf32, #tpu.memory_space<vmem>>, %arg3: memref<1x128xf32, #tpu.memory_space<vmem>>, %arg4: memref<1x128xf32, #tpu.memory_space<vmem>>, %arg5: memref<1x128xf32, #tpu.memory_space<vmem>>, %arg6: memref<1x128xf32, #tpu.memory_space<vmem>>, %arg7: memref<32x128xbf16, #tpu.memory_space<vmem>>) attributes {dimension_semantics = [#tpu.dimension_semantics<parallel>, #tpu.dimension_semantics<parallel>], iteration_bounds = array<i64: 1, 1>, scalar_prefetch = 0 : i64, scratch_operands = 0 : i64, tpu.core_type = #tpu.core_type<tc>, window_params = [{transform_indices = @transform_0, window_bounds = array<i64: 32, 128>}, {transform_indices = @transform_1, window_bounds = array<i64: 1, 128>}, {transform_indices = @transform_2, window_bounds = array<i64: 1, 128>}, {transform_indices = @transform_3, window_bounds = array<i64: 1, 128>}, {transform_indices = @transform_4, window_bounds = array<i64: 1, 128>}, {transform_indices = @transform_5, window_bounds = array<i64: 32, 128>}]} {
    %c0 = arith.constant 0 : index
    %c0_0 = arith.constant 0 : index
    %0 = vector.load %arg2[%c0, %c0_0] : memref<32x128xf32, #tpu.memory_space<vmem>>, vector<32x128xf32>
    %c0_1 = arith.constant 0 : index
    %c0_2 = arith.constant 0 : index
    %1 = vector.load %arg3[%c0_1, %c0_2] : memref<1x128xf32, #tpu.memory_space<vmem>>, vector<1x128xf32>
    %cst = arith.constant 3.125000e-02 : f32
    %2 = vector.broadcast %cst : f32 to vector<1x128xf32>
    %3 = arith.mulf %1, %2 : vector<1x128xf32>
    %c0_3 = arith.constant 0 : index
    %c0_4 = arith.constant 0 : index
    %4 = vector.load %arg4[%c0_3, %c0_4] : memref<1x128xf32, #tpu.memory_space<vmem>>, vector<1x128xf32>
    %cst_5 = arith.constant 3.125000e-02 : f32
    %5 = vector.broadcast %cst_5 : f32 to vector<1x128xf32>
    %6 = arith.mulf %4, %5 : vector<1x128xf32>
    %7 = arith.mulf %3, %3 : vector<1x128xf32>
    %8 = arith.subf %6, %7 : vector<1x128xf32>
    %cst_6 = arith.constant 0.000000e+00 : f32
    %9 = vector.broadcast %cst_6 : f32 to vector<1x128xf32>
    %10 = arith.maximumf %8, %9 : vector<1x128xf32>
    %11 = vector.broadcast %3 : vector<1x128xf32> to vector<32x128xf32>
    %12 = arith.subf %0, %11 : vector<32x128xf32>
    %cst_7 = arith.constant 9.99999974E-6 : f32
    %13 = vector.broadcast %cst_7 : f32 to vector<1x128xf32>
    %14 = arith.addf %10, %13 : vector<1x128xf32>
    %15 = math.rsqrt %14 : vector<1x128xf32>
    %16 = vector.broadcast %15 : vector<1x128xf32> to vector<32x128xf32>
    %17 = arith.mulf %12, %16 : vector<32x128xf32>
    %c0_8 = arith.constant 0 : index
    %c0_9 = arith.constant 0 : index
    %18 = vector.load %arg5[%c0_8, %c0_9] : memref<1x128xf32, #tpu.memory_space<vmem>>, vector<1x128xf32>
    %19 = vector.broadcast %18 : vector<1x128xf32> to vector<32x128xf32>
    %20 = arith.mulf %17, %19 : vector<32x128xf32>
    %c0_10 = arith.constant 0 : index
    %c0_11 = arith.constant 0 : index
    %21 = vector.load %arg6[%c0_10, %c0_11] : memref<1x128xf32, #tpu.memory_space<vmem>>, vector<1x128xf32>
    %22 = vector.broadcast %21 : vector<1x128xf32> to vector<32x128xf32>
    %23 = arith.addf %20, %22 : vector<32x128xf32>
    %cst_12 = arith.constant 0.000000e+00 : f32
    %24 = vector.broadcast %cst_12 : f32 to vector<32x128xf32>
    %25 = arith.cmpf ogt, %23, %24 : vector<32x128xf32>
    %cst_13 = arith.constant 2.000000e-01 : f32
    %26 = vector.broadcast %cst_13 : f32 to vector<32x128xf32>
    %27 = arith.mulf %26, %23 : vector<32x128xf32>
    %28 = arith.select %25, %23, %27 : vector<32x128xi1>, vector<32x128xf32>
    %29 = arith.truncf %28 : vector<32x128xf32> to vector<32x128xbf16>
    %c0_14 = arith.constant 0 : index
    %c0_15 = arith.constant 0 : index
    %30 = vector.load %arg7[%c0_14, %c0_15] : memref<32x128xbf16, #tpu.memory_space<vmem>>, vector<32x128xbf16>
    tpu.vector_store %arg7[%c0_14, %c0_15], %29 {strides = array<i32>} : memref<32x128xbf16, #tpu.memory_space<vmem>>, vector<32x128xbf16>,
    return
  }
  func.func @transform_0(%arg0: i32, %arg1: i32) -> (i32, i32) {
    %c0_i32 = arith.constant 0 : i32
    return %arg0, %arg1 : i32, i32
  }
  func.func @transform_1(%arg0: i32, %arg1: i32) -> (i32, i32) {
    %c0_i32 = arith.constant 0 : i32
    %c0_i32_0 = arith.constant 0 : i32
    return %c0_i32, %arg1 : i32, i32
  }
  func.func @transform_2(%arg0: i32, %arg1: i32) -> (i32, i32) {
    %c0_i32 = arith.constant 0 : i32
    %c0_i32_0 = arith.constant 0 : i32
    return %c0_i32, %arg1 : i32, i32
  }
  func.func @transform_3(%arg0: i32, %arg1: i32) -> (i32, i32) {
    %c0_i32 = arith.constant 0 : i32
    %c0_i32_0 = arith.constant 0 : i32
    return %c0_i32, %arg1 : i32, i32
  }
  func.func @transform_4(%arg0: i32, %arg1: i32) -> (i32, i32) {
    %c0_i32 = arith.constant 0 : i32
    %c0_i32_0 = arith.constant 0 : i32
    return %c0_i32, %arg1 : i32, i32
  }
  func.func @transform_5(%arg0: i32, %arg1: i32) -> (i32, i32) {
    %c0_i32 = arith.constant 0 : i32
    return %arg0, %arg1 : i32, i32
  }
}

module attributes {stable_mosaic.version = 11 : i64} {
  func.func @_gemm_bias_kernel(%arg0: i32, %arg1: i32, %arg2: i32, %arg3: memref<64x512xbf16, #tpu.memory_space<vmem>>, %arg4: memref<512x128xbf16, #tpu.memory_space<vmem>>, %arg5: memref<1x128xf32, #tpu.memory_space<vmem>>, %arg6: memref<64x128xf32, #tpu.memory_space<vmem>>, %arg7: memref<64x128xf32, #tpu.memory_space<vmem>>) attributes {dimension_semantics = [#tpu.dimension_semantics<parallel>, #tpu.dimension_semantics<parallel>, #tpu.dimension_semantics<arbitrary>], iteration_bounds = array<i64: 1, 1, 2>, scalar_prefetch = 0 : i64, scratch_operands = 1 : i64, tpu.core_type = #tpu.core_type<tc>, window_params = [{transform_indices = @transform_0, window_bounds = array<i64: 64, 512>}, {transform_indices = @transform_1, window_bounds = array<i64: 512, 128>}, {transform_indices = @transform_2, window_bounds = array<i64: 1, 128>}, {transform_indices = @transform_3, window_bounds = array<i64: 64, 128>}]} {
    %c0_i32 = arith.constant 0 : i32
    %0 = arith.cmpi eq, %arg2, %c0_i32 : i32
    %1 = arith.extui %0 : i1 to i32
    %c0_i32_0 = arith.constant 0 : i32
    %2 = arith.cmpi ne, %1, %c0_i32_0 : i32
    scf.if %2 {
      %cst_9 = arith.constant 0.000000e+00 : f32
      %12 = vector.broadcast %cst_9 : f32 to vector<64x128xf32>
      %c0_10 = arith.constant 0 : index
      %c0_11 = arith.constant 0 : index
      %13 = vector.load %arg7[%c0_10, %c0_11] : memref<64x128xf32, #tpu.memory_space<vmem>>, vector<64x128xf32>
      tpu.vector_store %arg7[%c0_10, %c0_11], %12 {strides = array<i32>} : memref<64x128xf32, #tpu.memory_space<vmem>>, vector<64x128xf32>,
    } else {
    }
    %c0 = arith.constant 0 : index
    %c0_1 = arith.constant 0 : index
    %3 = vector.load %arg7[%c0, %c0_1] : memref<64x128xf32, #tpu.memory_space<vmem>>, vector<64x128xf32>
    %c0_2 = arith.constant 0 : index
    %c0_3 = arith.constant 0 : index
    %4 = vector.load %arg3[%c0_2, %c0_3] : memref<64x512xbf16, #tpu.memory_space<vmem>>, vector<64x512xbf16>
    %c0_4 = arith.constant 0 : index
    %c0_5 = arith.constant 0 : index
    %5 = vector.load %arg4[%c0_4, %c0_5] : memref<512x128xbf16, #tpu.memory_space<vmem>>, vector<512x128xbf16>
    %cst = arith.constant dense<0.000000e+00> : vector<64x128xf32>
    %6 = tpu.matmul %4, %5, %cst {dimension_numbers = #tpu.dot_dimension_numbers<[1], [0], [0], [1], [0, 0, 1, 1], [], []>} : vector<64x512xbf16>, vector<512x128xbf16>, vector<64x128xf32> -> vector<64x128xf32>
    %7 = arith.addf %3, %6 : vector<64x128xf32>
    %c0_6 = arith.constant 0 : index
    %c0_7 = arith.constant 0 : index
    %8 = vector.load %arg7[%c0_6, %c0_7] : memref<64x128xf32, #tpu.memory_space<vmem>>, vector<64x128xf32>
    tpu.vector_store %arg7[%c0_6, %c0_7], %7 {strides = array<i32>} : memref<64x128xf32, #tpu.memory_space<vmem>>, vector<64x128xf32>,
    %c1_i32 = arith.constant 1 : i32
    %9 = arith.cmpi eq, %arg2, %c1_i32 : i32
    %10 = arith.extui %9 : i1 to i32
    %c0_i32_8 = arith.constant 0 : i32
    %11 = arith.cmpi ne, %10, %c0_i32_8 : i32
    scf.if %11 {
      %c0_9 = arith.constant 0 : index
      %c0_10 = arith.constant 0 : index
      %12 = vector.load %arg7[%c0_9, %c0_10] : memref<64x128xf32, #tpu.memory_space<vmem>>, vector<64x128xf32>
      %c0_11 = arith.constant 0 : index
      %c0_12 = arith.constant 0 : index
      %13 = vector.load %arg5[%c0_11, %c0_12] : memref<1x128xf32, #tpu.memory_space<vmem>>, vector<1x128xf32>
      %14 = vector.broadcast %13 : vector<1x128xf32> to vector<64x128xf32>
      %15 = arith.addf %12, %14 : vector<64x128xf32>
      %c0_13 = arith.constant 0 : index
      %c0_14 = arith.constant 0 : index
      %16 = vector.load %arg6[%c0_13, %c0_14] : memref<64x128xf32, #tpu.memory_space<vmem>>, vector<64x128xf32>
      tpu.vector_store %arg6[%c0_13, %c0_14], %15 {strides = array<i32>} : memref<64x128xf32, #tpu.memory_space<vmem>>, vector<64x128xf32>,
    } else {
    }
    return
  }
  func.func @transform_0(%arg0: i32, %arg1: i32, %arg2: i32) -> (i32, i32) {
    %c0_i32 = arith.constant 0 : i32
    return %arg0, %arg2 : i32, i32
  }
  func.func @transform_1(%arg0: i32, %arg1: i32, %arg2: i32) -> (i32, i32) {
    %c0_i32 = arith.constant 0 : i32
    return %arg2, %arg1 : i32, i32
  }
  func.func @transform_2(%arg0: i32, %arg1: i32, %arg2: i32) -> (i32, i32) {
    %c0_i32 = arith.constant 0 : i32
    %c0_i32_0 = arith.constant 0 : i32
    return %c0_i32, %arg1 : i32, i32
  }
  func.func @transform_3(%arg0: i32, %arg1: i32, %arg2: i32) -> (i32, i32) {
    %c0_i32 = arith.constant 0 : i32
    return %arg0, %arg1 : i32, i32
  }
}

module attributes {stable_mosaic.version = 11 : i64} {
  func.func @_gemm_bias_kernel(%arg0: i32, %arg1: i32, %arg2: i32, %arg3: memref<16x128xbf16, #tpu.memory_space<vmem>>, %arg4: memref<128x128xbf16, #tpu.memory_space<vmem>>, %arg5: memref<1x128xf32, #tpu.memory_space<vmem>>, %arg6: memref<16x128xf32, #tpu.memory_space<vmem>>, %arg7: memref<16x128xf32, #tpu.memory_space<vmem>>) attributes {dimension_semantics = [#tpu.dimension_semantics<parallel>, #tpu.dimension_semantics<parallel>, #tpu.dimension_semantics<arbitrary>], iteration_bounds = array<i64: 1, 1, 1>, scalar_prefetch = 0 : i64, scratch_operands = 1 : i64, tpu.core_type = #tpu.core_type<tc>, window_params = [{transform_indices = @transform_0, window_bounds = array<i64: 16, 128>}, {transform_indices = @transform_1, window_bounds = array<i64: 128, 128>}, {transform_indices = @transform_2, window_bounds = array<i64: 1, 128>}, {transform_indices = @transform_3, window_bounds = array<i64: 16, 128>}]} {
    %c0_i32 = arith.constant 0 : i32
    %0 = arith.cmpi eq, %arg2, %c0_i32 : i32
    %1 = arith.extui %0 : i1 to i32
    %c0_i32_0 = arith.constant 0 : i32
    %2 = arith.cmpi ne, %1, %c0_i32_0 : i32
    scf.if %2 {
      %cst_10 = arith.constant 0.000000e+00 : f32
      %12 = vector.broadcast %cst_10 : f32 to vector<16x128xf32>
      %c0_11 = arith.constant 0 : index
      %c0_12 = arith.constant 0 : index
      %13 = vector.load %arg7[%c0_11, %c0_12] : memref<16x128xf32, #tpu.memory_space<vmem>>, vector<16x128xf32>
      tpu.vector_store %arg7[%c0_11, %c0_12], %12 {strides = array<i32>} : memref<16x128xf32, #tpu.memory_space<vmem>>, vector<16x128xf32>,
    } else {
    }
    %c0 = arith.constant 0 : index
    %c0_1 = arith.constant 0 : index
    %3 = vector.load %arg7[%c0, %c0_1] : memref<16x128xf32, #tpu.memory_space<vmem>>, vector<16x128xf32>
    %c0_2 = arith.constant 0 : index
    %c0_3 = arith.constant 0 : index
    %4 = vector.load %arg3[%c0_2, %c0_3] : memref<16x128xbf16, #tpu.memory_space<vmem>>, vector<16x128xbf16>
    %c0_4 = arith.constant 0 : index
    %c0_5 = arith.constant 0 : index
    %5 = vector.load %arg4[%c0_4, %c0_5] : memref<128x128xbf16, #tpu.memory_space<vmem>>, vector<128x128xbf16>
    %cst = arith.constant dense<0.000000e+00> : vector<16x128xf32>
    %6 = tpu.matmul %4, %5, %cst {dimension_numbers = #tpu.dot_dimension_numbers<[1], [0], [0], [1], [0, 0, 1, 1], [], []>} : vector<16x128xbf16>, vector<128x128xbf16>, vector<16x128xf32> -> vector<16x128xf32>
    %7 = arith.addf %3, %6 : vector<16x128xf32>
    %c0_6 = arith.constant 0 : index
    %c0_7 = arith.constant 0 : index
    %8 = vector.load %arg7[%c0_6, %c0_7] : memref<16x128xf32, #tpu.memory_space<vmem>>, vector<16x128xf32>
    tpu.vector_store %arg7[%c0_6, %c0_7], %7 {strides = array<i32>} : memref<16x128xf32, #tpu.memory_space<vmem>>, vector<16x128xf32>,
    %c0_i32_8 = arith.constant 0 : i32
    %9 = arith.cmpi eq, %arg2, %c0_i32_8 : i32
    %10 = arith.extui %9 : i1 to i32
    %c0_i32_9 = arith.constant 0 : i32
    %11 = arith.cmpi ne, %10, %c0_i32_9 : i32
    scf.if %11 {
      %c0_10 = arith.constant 0 : index
      %c0_11 = arith.constant 0 : index
      %12 = vector.load %arg7[%c0_10, %c0_11] : memref<16x128xf32, #tpu.memory_space<vmem>>, vector<16x128xf32>
      %c0_12 = arith.constant 0 : index
      %c0_13 = arith.constant 0 : index
      %13 = vector.load %arg5[%c0_12, %c0_13] : memref<1x128xf32, #tpu.memory_space<vmem>>, vector<1x128xf32>
      %14 = vector.broadcast %13 : vector<1x128xf32> to vector<16x128xf32>
      %15 = arith.addf %12, %14 : vector<16x128xf32>
      %cst_14 = arith.constant 0.000000e+00 : f32
      %16 = vector.broadcast %cst_14 : f32 to vector<16x128xf32>
      %17 = arith.cmpf ogt, %15, %16 : vector<16x128xf32>
      %cst_15 = arith.constant 2.000000e-01 : f32
      %18 = vector.broadcast %cst_15 : f32 to vector<16x128xf32>
      %19 = arith.mulf %18, %15 : vector<16x128xf32>
      %20 = arith.select %17, %15, %19 : vector<16x128xi1>, vector<16x128xf32>
      %c0_16 = arith.constant 0 : index
      %c0_17 = arith.constant 0 : index
      %21 = vector.load %arg6[%c0_16, %c0_17] : memref<16x128xf32, #tpu.memory_space<vmem>>, vector<16x128xf32>
      tpu.vector_store %arg6[%c0_16, %c0_17], %20 {strides = array<i32>} : memref<16x128xf32, #tpu.memory_space<vmem>>, vector<16x128xf32>,
    } else {
    }
    return
  }
  func.func @transform_0(%arg0: i32, %arg1: i32, %arg2: i32) -> (i32, i32) {
    %c0_i32 = arith.constant 0 : i32
    return %arg0, %arg2 : i32, i32
  }
  func.func @transform_1(%arg0: i32, %arg1: i32, %arg2: i32) -> (i32, i32) {
    %c0_i32 = arith.constant 0 : i32
    return %arg2, %arg1 : i32, i32
  }
  func.func @transform_2(%arg0: i32, %arg1: i32, %arg2: i32) -> (i32, i32) {
    %c0_i32 = arith.constant 0 : i32
    %c0_i32_0 = arith.constant 0 : i32
    return %c0_i32, %arg1 : i32, i32
  }
  func.func @transform_3(%arg0: i32, %arg1: i32, %arg2: i32) -> (i32, i32) {
    %c0_i32 = arith.constant 0 : i32
    return %arg0, %arg1 : i32, i32
  }
}

module attributes {stable_mosaic.version = 11 : i64} {
  func.func @_gemm_bias_kernel(%arg0: i32, %arg1: i32, %arg2: i32, %arg3: memref<16x128xbf16, #tpu.memory_space<vmem>>, %arg4: memref<128x128xbf16, #tpu.memory_space<vmem>>, %arg5: memref<1x128xf32, #tpu.memory_space<vmem>>, %arg6: memref<16x128xf32, #tpu.memory_space<vmem>>, %arg7: memref<16x128xf32, #tpu.memory_space<vmem>>) attributes {dimension_semantics = [#tpu.dimension_semantics<parallel>, #tpu.dimension_semantics<parallel>, #tpu.dimension_semantics<arbitrary>], iteration_bounds = array<i64: 1, 1, 1>, scalar_prefetch = 0 : i64, scratch_operands = 1 : i64, tpu.core_type = #tpu.core_type<tc>, window_params = [{transform_indices = @transform_0, window_bounds = array<i64: 16, 128>}, {transform_indices = @transform_1, window_bounds = array<i64: 128, 128>}, {transform_indices = @transform_2, window_bounds = array<i64: 1, 128>}, {transform_indices = @transform_3, window_bounds = array<i64: 16, 128>}]} {
    %c0_i32 = arith.constant 0 : i32
    %0 = arith.cmpi eq, %arg2, %c0_i32 : i32
    %1 = arith.extui %0 : i1 to i32
    %c0_i32_0 = arith.constant 0 : i32
    %2 = arith.cmpi ne, %1, %c0_i32_0 : i32
    scf.if %2 {
      %cst_10 = arith.constant 0.000000e+00 : f32
      %12 = vector.broadcast %cst_10 : f32 to vector<16x128xf32>
      %c0_11 = arith.constant 0 : index
      %c0_12 = arith.constant 0 : index
      %13 = vector.load %arg7[%c0_11, %c0_12] : memref<16x128xf32, #tpu.memory_space<vmem>>, vector<16x128xf32>
      tpu.vector_store %arg7[%c0_11, %c0_12], %12 {strides = array<i32>} : memref<16x128xf32, #tpu.memory_space<vmem>>, vector<16x128xf32>,
    } else {
    }
    %c0 = arith.constant 0 : index
    %c0_1 = arith.constant 0 : index
    %3 = vector.load %arg7[%c0, %c0_1] : memref<16x128xf32, #tpu.memory_space<vmem>>, vector<16x128xf32>
    %c0_2 = arith.constant 0 : index
    %c0_3 = arith.constant 0 : index
    %4 = vector.load %arg3[%c0_2, %c0_3] : memref<16x128xbf16, #tpu.memory_space<vmem>>, vector<16x128xbf16>
    %c0_4 = arith.constant 0 : index
    %c0_5 = arith.constant 0 : index
    %5 = vector.load %arg4[%c0_4, %c0_5] : memref<128x128xbf16, #tpu.memory_space<vmem>>, vector<128x128xbf16>
    %cst = arith.constant dense<0.000000e+00> : vector<16x128xf32>
    %6 = tpu.matmul %4, %5, %cst {dimension_numbers = #tpu.dot_dimension_numbers<[1], [0], [0], [1], [0, 0, 1, 1], [], []>} : vector<16x128xbf16>, vector<128x128xbf16>, vector<16x128xf32> -> vector<16x128xf32>
    %7 = arith.addf %3, %6 : vector<16x128xf32>
    %c0_6 = arith.constant 0 : index
    %c0_7 = arith.constant 0 : index
    %8 = vector.load %arg7[%c0_6, %c0_7] : memref<16x128xf32, #tpu.memory_space<vmem>>, vector<16x128xf32>
    tpu.vector_store %arg7[%c0_6, %c0_7], %7 {strides = array<i32>} : memref<16x128xf32, #tpu.memory_space<vmem>>, vector<16x128xf32>,
    %c0_i32_8 = arith.constant 0 : i32
    %9 = arith.cmpi eq, %arg2, %c0_i32_8 : i32
    %10 = arith.extui %9 : i1 to i32
    %c0_i32_9 = arith.constant 0 : i32
    %11 = arith.cmpi ne, %10, %c0_i32_9 : i32
    scf.if %11 {
      %c0_10 = arith.constant 0 : index
      %c0_11 = arith.constant 0 : index
      %12 = vector.load %arg7[%c0_10, %c0_11] : memref<16x128xf32, #tpu.memory_space<vmem>>, vector<16x128xf32>
      %c0_12 = arith.constant 0 : index
      %c0_13 = arith.constant 0 : index
      %13 = vector.load %arg5[%c0_12, %c0_13] : memref<1x128xf32, #tpu.memory_space<vmem>>, vector<1x128xf32>
      %14 = vector.broadcast %13 : vector<1x128xf32> to vector<16x128xf32>
      %15 = arith.addf %12, %14 : vector<16x128xf32>
      %c0_14 = arith.constant 0 : index
      %c0_15 = arith.constant 0 : index
      %16 = vector.load %arg6[%c0_14, %c0_15] : memref<16x128xf32, #tpu.memory_space<vmem>>, vector<16x128xf32>
      tpu.vector_store %arg6[%c0_14, %c0_15], %15 {strides = array<i32>} : memref<16x128xf32, #tpu.memory_space<vmem>>, vector<16x128xf32>,
    } else {
    }
    return
  }
  func.func @transform_0(%arg0: i32, %arg1: i32, %arg2: i32) -> (i32, i32) {
    %c0_i32 = arith.constant 0 : i32
    return %arg0, %arg2 : i32, i32
  }
  func.func @transform_1(%arg0: i32, %arg1: i32, %arg2: i32) -> (i32, i32) {
    %c0_i32 = arith.constant 0 : i32
    return %arg2, %arg1 : i32, i32
  }
  func.func @transform_2(%arg0: i32, %arg1: i32, %arg2: i32) -> (i32, i32) {
    %c0_i32 = arith.constant 0 : i32
    %c0_i32_0 = arith.constant 0 : i32
    return %c0_i32, %arg1 : i32, i32
  }
  func.func @transform_3(%arg0: i32, %arg1: i32, %arg2: i32) -> (i32, i32) {
    %c0_i32 = arith.constant 0 : i32
    return %arg0, %arg1 : i32, i32
  }
}

</mosaic_0001>

<bundles_post_ra>
// kernel: _lambda_.10
= control target key start
LH: loop header
LB: loop body
LE: loop exit
PB: predicated region body
PF: predicated region fallthrough
CT: control target
= control target key end

     0   :  { %s1091_s12 = smov 0   ;;  %s1093_s13 = smov 0   ;;  %s1202_s0 = inlined_call_operand.vmem [shape: bf16[256,128], index: 0, kind: input, shape index: {}]   ;;  %s1203_s1 = inlined_call_operand.vmem [shape: bf16[128,128], index: 1, kind: input, shape index: {}]   ;;  %s1204_s2 = inlined_call_operand.vmem [shape: f32[1,128], index: 2, kind: input, shape index: {}]   ;;  %s1205_s3 = inlined_call_operand.vmem [shape: bf16[256,128], index: 3, kind: output, shape index: {}]  }
   0x1   :  { %s1095_s14 = smov 0  }
   0x2 LB: > { %s32_s15 = sadd.s32 1, %s1065_s13  ;;  %p840_p0 = scmp.ge.s32.totalorder %s1069_s14, 1  ;;  %s1069_s14 = sphi %s1095_s14, %s13_s14   ;;  %s1065_s13 = sphi %s1093_s13, %s1207_s13   ;;  %s1061_s12 = sphi %s1091_s12, %s1206_s12  }
   0x3   : > { %p34_p1 = scmp.ge.s32.totalorder %s32_s15, 2  ;;  %p188_p2 = scmp.lt.s32.totalorder %s1069_s14, 3 }
   0x5   : > { %s1209_s15 = smov (%p34_p1, %s32_s15), 0  ;;  %p189_p3 = pnand %p840_p0, %p188_p2 }
   0x6   : > { %s841_s18 = sshll.u32 (!%p189_p3), %s1061_s12, 4 }
   0x7   : > { %192 = sbr.rel (%p189_p3) target bundleno = 261 (0x105), region = 32  ;;  %p230_p4 = scmp.lt.s32.totalorder (!%p189_p3), %s841_s18, 31 }
   0xc   : > { %v1031_v0 = vld [vmem:[%s1203_s1 + $0x38] sm:$0xff]   ;;  %v1032_v1 = vld [vmem:[%s1203_s1 + $0x30] sm:$0xff]   ;;  %s1211_s18 = smov (!%p230_p4, %s841_s18), 31  ;;  %v1033_v2 = vld [vmem:[%s1203_s1 + $0x28] sm:$0xff]  }
   0xd   : > { %959 = vmatprep.subr.bf16.mxu0 %v1031_v0  ;;  %991 = vmatprep.subr.bf16.mxu1 %v1031_v0  ;;  %s842_s23 = sshll.u32 %s1211_s18, 2  ;;  %v1034_v3 = vld [vmem:[%s1203_s1 + $0x20] sm:$0xff]   ;;  %v1035_v6 = vld [vmem:[%s1203_s1 + $0x18] sm:$0xff]   ;;  %v1036_v7 = vld [vmem:[%s1203_s1 + $0x10] sm:$0xff]  }
   0xe   : > { %960 = vmatpush3.bf16.msra.mxu0 %v1031_v0  ;;  %999 = vmatpush3.bf16.msra.mxu1 %v1031_v0  ;;  %s1126_s26 = scalar_lea.vmem %s1202_s0, %s842_s23  ;;  %v1037_v8 = vld [vmem:[%s1203_s1 + $0x8] sm:$0xff]   ;;  %v1038_v9 = vld [vmem:[%s1203_s1] sm:$0xff]   ;;  %s1169_s17 = scalar_lea.vmem %s1205_s3, %s842_s23 }
   0xf   : > { %961 = vmatprep.subr.bf16.mxu0 %v1032_v1  ;;  %992 = vmatprep.subr.bf16.mxu1 %v1032_v1  ;;  %v1039_v4 = vld [vmem:[%s1126_s26] sm:$0xff]   ;;  %v1041_v10 = vld [vmem:[%s1126_s26 + $0x8] sm:$0xff]   ;;  %v1043_v12 = vld [vmem:[%s1126_s26 + $0x10] sm:$0xff]  }
  0x10   : > { %v1040_v5 = vld [vmem:[%s1126_s26 + $0x20] sm:$0xff]   ;;  %975 = vmatprep.mubr.bf16.mxu0 %v1039_v4  ;;  %v1042_v11 = vld [vmem:[%s1126_s26 + $0x28] sm:$0xff]   ;;  %v1044_v13 = vld [vmem:[%s1126_s26 + $0x30] sm:$0xff]  }
  0x11   : > { %983 = vmatprep.mubr.bf16.mxu1 %v1040_v5  ;;  %v1045_v14 = vld [vmem:[%s1126_s26 + $0x18] sm:$0xff]   ;;  %v1154_v16 = vld [vmem:[%s1204_s2] ss:$0 sm:$0xff] }
  0x12   : > { %962 = vmatpush3.bf16.msra.mxu0 %v1032_v1  ;;  %1000 = vmatpush3.bf16.msra.mxu1 %v1032_v1  ;;  %v1046_v15 = vld [vmem:[%s1126_s26 + $0x38] sm:$0xff]  }
  0x13   : > { %963 = vmatprep.subr.bf16.mxu0 %v1033_v2  ;;  %993 = vmatprep.subr.bf16.mxu1 %v1033_v2 }
  0x16   : > { %964 = vmatpush3.bf16.msra.mxu0 %v1033_v2  ;;  %1001 = vmatpush3.bf16.msra.mxu1 %v1033_v2 }
  0x17   : > { %965 = vmatprep.subr.bf16.mxu0 %v1034_v3  ;;  %994 = vmatprep.subr.bf16.mxu1 %v1034_v3 }
  0x1a   : > { %966 = vmatpush3.bf16.msra.mxu0 %v1034_v3  ;;  %1002 = vmatpush3.bf16.msra.mxu1 %v1034_v3 }
  0x1b   : > { %967 = vmatprep.subr.bf16.mxu0 %v1035_v6  ;;  %995 = vmatprep.subr.bf16.mxu1 %v1035_v6 }
  0x1e   : > { %968 = vmatpush3.bf16.msra.mxu0 %v1035_v6  ;;  %1003 = vmatpush3.bf16.msra.mxu1 %v1035_v6 }
  0x1f   : > { %969 = vmatprep.subr.bf16.mxu0 %v1036_v7  ;;  %996 = vmatprep.subr.bf16.mxu1 %v1036_v7 }
  0x22   : > { %970 = vmatpush3.bf16.msra.mxu0 %v1036_v7  ;;  %1004 = vmatpush3.bf16.msra.mxu1 %v1036_v7 }
  0x23   : > { %971 = vmatprep.subr.bf16.mxu0 %v1037_v8  ;;  %997 = vmatprep.subr.bf16.mxu1 %v1037_v8 }
  0x26   : > { %972 = vmatpush3.bf16.msra.mxu0 %v1037_v8  ;;  %1005 = vmatpush3.bf16.msra.mxu1 %v1037_v8 }
  0x27   : > { %973 = vmatprep.subr.bf16.mxu0 %v1038_v9  ;;  %998 = vmatprep.subr.bf16.mxu1 %v1038_v9 }
  0x2a   : > { %974 = vmatpush3.bf16.msra.mxu0 %v1038_v9  ;;  %1006 = vmatpush3.bf16.msra.mxu1 %v1038_v9 }
  0x2d   : > { %976 = vmatmul.mubr.bf16.vlgmr.msra.gmra.mxu0 %v1041_v10  ;;  %984 = vmatmul.mubr.bf16.vlgmr.msra.gmra.mxu1 %v1042_v11 }
  0x2e   : > { %979 = vmatprep.mubr.bf16.mxu0 %v1043_v12  ;;  %987 = vmatprep.mubr.bf16.mxu1 %v1044_v13 }
  0x35   : > { %980 = vmatmul.mubr.bf16.gmra.mxu0 %v1045_v14  ;;  %988 = vmatmul.mubr.bf16.gmra.mxu1 %v1046_v15 }
  0xed   : > { %v977_v17 = vpop.f32.mrf.mxu0  ;;  %v985_v18 = vpop.f32.mrf.mxu1 }
  0xee   : > { %v581_v19 = vadd.f32 %v977_v17, %v1154_v16  ;;  %v589_v20 = vadd.f32 %v985_v18, %v1154_v16 }
  0xef   : > { %v458_v21 = vpop.f32.mrf.mxu0  ;;  %v490_v22 = vpop.f32.mrf.mxu1 }
  0xf0   : > { %vm597_vm0 = vcmp.gt.f32.partialorder %v581_v19, 0.0  ;;  %v613_v23 = vmul.f32 0.2, %v581_v19  ;;  %vm605_vm1 = vcmp.gt.f32.partialorder %v589_v20, 0.0  ;;  %v621_v24 = vmul.f32 0.2, %v589_v20 }
  0xf1   : > { %v579_v25 = vadd.f32 %v1154_v16, %v458_v21  ;;  %v587_v26 = vadd.f32 %v1154_v16, %v490_v22  ;;  %v978_v27 = vpop.f32.mrf.mxu0  ;;  %v986_v28 = vpop.f32.mrf.mxu1 }
  0xf2   : > { %v582_v29 = vadd.f32 %v978_v27, %v1154_v16  ;;  %v590_v30 = vadd.f32 %v986_v28, %v1154_v16  ;;  %v629_v31 = vsel %vm597_vm0, %v581_v19, %v613_v23  ;;  %v637_v32 = vsel %vm605_vm1, %v589_v20, %v621_v24 }
  0xf3   : > { %vm595_vm2 = vcmp.gt.f32.partialorder %v579_v25, 0.0  ;;  %v611_v33 = vmul.f32 0.2, %v579_v25  ;;  %v461_v34 = vpop.f32.mrf.mxu0  ;;  %v493_v35 = vpop.f32.mrf.mxu1  ;;  %vm603_vm5 = vcmp.gt.f32.partialorder %v587_v26, 0.0  ;;  %v619_v38 = vmul.f32 0.2, %v587_v26 }
  0xf4   : > { %vm598_vm3 = vcmp.gt.f32.partialorder %v582_v29, 0.0  ;;  %v614_v36 = vmul.f32 0.2, %v582_v29  ;;  %vm606_vm4 = vcmp.gt.f32.partialorder %v590_v30, 0.0  ;;  %v622_v37 = vmul.f32 0.2, %v590_v30 }
  0xf5   : > { %v580_v39 = vadd.f32 %v1154_v16, %v461_v34  ;;  %v588_v40 = vadd.f32 %v1154_v16, %v493_v35  ;;  %v981_v41 = vpop.f32.mrf.mxu0  ;;  %v989_v42 = vpop.f32.mrf.mxu1  ;;  %v627_v53 = vsel %vm595_vm2, %v579_v25, %v611_v33  ;;  %v635_v58 = vsel %vm603_vm5, %v587_v26, %v619_v38 }
  0xf6   : > { %v630_v43 = vsel %vm598_vm3, %v582_v29, %v614_v36  ;;  %v638_v44 = vsel %vm606_vm4, %v590_v30, %v622_v37  ;;  %v585_v45 = vadd.f32 %v981_v41, %v1154_v16  ;;  %v593_v46 = vadd.f32 %v989_v42, %v1154_v16 }
  0xf7   : > { %v904_v47 = vpack.c.bf16 %v630_v43, %v629_v31  ;;  %v924_v48 = vpack.c.bf16 %v638_v44, %v637_v32  ;;  %vm596_vm6 = vcmp.gt.f32.partialorder %v580_v39, 0.0  ;;  %v612_v49 = vmul.f32 0.2, %v580_v39  ;;  %v474_v50 = vpop.f32.mrf.mxu0  ;;  %v506_v51 = vpop.f32.mrf.mxu1 }
  0xf8   : > { %vm604_vm7 = vcmp.gt.f32.partialorder %v588_v40, 0.0  ;;  %v620_v52 = vmul.f32 0.2, %v588_v40  ;;  %v583_v55 = vadd.f32 %v1154_v16, %v474_v50  ;;  %v591_v61 = vadd.f32 %v1154_v16, %v506_v51 }
  0xf9   : > { %936 = vst [vmem:[%s1169_s17 + $0x8] sm:$0xff] %v904_v47   ;;  %940 = vst [vmem:[%s1169_s17 + $0x28] sm:$0xff] %v924_v48   ;;  %v628_v54 = vsel %vm596_vm6, %v580_v39, %v612_v49  ;;  %v982_v56 = vpop.f32.mrf.mxu0  ;;  %v990_v57 = vpop.f32.mrf.mxu1  ;;  %vm601_vm8 = vcmp.gt.f32.partialorder %v585_v45, 0.0  ;;  %v617_v63 = vmul.f32 0.2, %v585_v45  ;;  %vm609_vm9 = vcmp.gt.f32.partialorder %v593_v46, 0.0 }
  0xfa   : > { %v899_v59 = vpack.c.bf16 %v628_v54, %v627_v53  ;;  %v636_v60 = vsel %vm604_vm7, %v588_v40, %v620_v52  ;;  %v625_v2 = vmul.f32 0.2, %v593_v46  ;;  %vm599_vm10 = vcmp.gt.f32.partialorder %v583_v55, 0.0 }
  0xfb   : > { %v919_v62 = vpack.c.bf16 %v636_v60, %v635_v58  ;;  %v477_v0 = vpop.f32.mrf.mxu0  ;;  %v509_v1 = vpop.f32.mrf.mxu1  ;;  %v586_v3 = vadd.f32 %v982_v56, %v1154_v16  ;;  %v594_v4 = vadd.f32 %v990_v57, %v1154_v16  ;;  %v615_v5 = vmul.f32 0.2, %v583_v55 }
  0xfc   : > { %900 = vst [vmem:[%s1169_s17] sm:$0xff] %v899_v59   ;;  %vm607_vm11 = vcmp.gt.f32.partialorder %v591_v61, 0.0  ;;  %v584_v6 = vadd.f32 %v1154_v16, %v477_v0  ;;  %v592_v7 = vadd.f32 %v1154_v16, %v509_v1  ;;  %v623_v8 = vmul.f32 0.2, %v591_v61 }
  0xfd   : > { %939 = vst [vmem:[%s1169_s17 + $0x20] sm:$0xff] %v919_v62   ;;  %vm602_vm12 = vcmp.gt.f32.partialorder %v586_v3, 0.0  ;;  %v618_v9 = vmul.f32 0.2, %v586_v3  ;;  %vm610_vm13 = vcmp.gt.f32.partialorder %v594_v4, 0.0  ;;  %v633_v12 = vsel %vm601_vm8, %v585_v45, %v617_v63 }
  0xfe   : > { %v626_v10 = vmul.f32 0.2, %v594_v4  ;;  %vm600_vm14 = vcmp.gt.f32.partialorder %v584_v6, 0.0  ;;  %v616_v11 = vmul.f32 0.2, %v584_v6  ;;  %vm608_vm15 = vcmp.gt.f32.partialorder %v592_v7, 0.0 }
  0xff   : > { %v641_v13 = vsel %vm609_vm9, %v593_v46, %v625_v2  ;;  %v634_v14 = vsel %vm602_vm12, %v586_v3, %v618_v9  ;;  %v624_v15 = vmul.f32 0.2, %v592_v7  ;;  %v631_v16 = vsel %vm599_vm10, %v583_v55, %v615_v5 }
 0x100   : > { %v914_v17 = vpack.c.bf16 %v634_v14, %v633_v12  ;;  %v642_v18 = vsel %vm610_vm13, %v594_v4, %v626_v10  ;;  %v632_v19 = vsel %vm600_vm14, %v584_v6, %v616_v11  ;;  %v639_v20 = vsel %vm607_vm11, %v591_v61, %v623_v8 }
 0x101   : > { %v934_v21 = vpack.c.bf16 %v642_v18, %v641_v13  ;;  %v909_v22 = vpack.c.bf16 %v632_v19, %v631_v16  ;;  %v640_v23 = vsel %vm608_vm15, %v592_v7, %v624_v15 }
 0x102   : > { %938 = vst [vmem:[%s1169_s17 + $0x18] sm:$0xff] %v914_v17   ;;  %v929_v24 = vpack.c.bf16 %v640_v23, %v639_v20 }
 0x103   : > { %942 = vst [vmem:[%s1169_s17 + $0x38] sm:$0xff] %v934_v21   ;;  %937 = vst [vmem:[%s1169_s17 + $0x10] sm:$0xff] %v909_v22  }
 0x104   : > { %941 = vst [vmem:[%s1169_s17 + $0x30] sm:$0xff] %v929_v24  }
 0x105 PF: > { %s13_s14 = sadd.s32 1, %s1069_s14   ;;  %s1206_s12 = smov %s1065_s13 }
 0x106   : > { %p10_p5 = scmp.ge.s32.totalorder %s13_s14, 4   ;;  %s1207_s13 = smov %s1209_s15 }
 0x108   :  { %12 = sbr.rel (!%p10_p5) target bundleno = 2 (0x2), region = 76 }

// kernel: _lambda_.12
= control target key start
LH: loop header
LB: loop body
LE: loop exit
PB: predicated region body
PF: predicated region fallthrough
CT: control target
= control target key end

     0   :  { %v36_v7 = vlaneseq  ;;  %s284_s1 = inlined_call_operand.vmem [shape: f32[1,128], index: 1, kind: input, shape index: {}]   ;;  %s285_s2 = inlined_call_operand.vmem [shape: f32[1,128], index: 2, kind: input, shape index: {}]   ;;  %s286_s0 = inlined_call_operand.vmem [shape: f32[64,128], index: 0, kind: input, shape index: {}]   ;;  %s287_s3 = inlined_call_operand.vmem [shape: f32[1,128], index: 3, kind: input, shape index: {}]   ;;  %s288_s4 = inlined_call_operand.vmem [shape: f32[1,128], index: 4, kind: input, shape index: {}]   ;;  %s289_s5 = inlined_call_operand.vmem [shape: bf16[64,128], index: 5, kind: output, shape index: {}]  }
   0x1   :  { %v28_v0 = vld [vmem:[%s284_s1] sm:$0x1]  ;;  %v21_v12 = vld [vmem:[%s286_s0 + $0x8] sm:$0xff]  ;;  %v22_v14 = vld [vmem:[%s286_s0 + $0x10] sm:$0xff] }
   0x2   :  { %v29_v1 = vmul.f32 0.02, %v28_v0  ;;  %v30_v2 = vld [vmem:[%s285_s2] sm:$0x1]  ;;  %v37_v9 = vshrl.u32 %v36_v7, 7  ;;  %v23_v15 = vld [vmem:[%s286_s0 + $0x18] sm:$0xff] }
   0x3   :  { %v31_v3 = vmul.f32 0.02, %v30_v2  ;;  %v20_v11 = vld [vmem:[%s286_s0] sm:$0xff]  ;;  %v25_v17 = vld [vmem:[%s286_s0 + $0x28] sm:$0xff]  ;;  %v26_v18 = vld [vmem:[%s286_s0 + $0x30] sm:$0xff] }
   0x4   :  { %v32_v4 = vmul.f32 %v29_v1, %v29_v1  ;;  %v38_v10 = vsub.s32 0, %v37_v9  ;;  %v24_v16 = vld [vmem:[%s286_s0 + $0x20] sm:$0xff]  ;;  %v27_v19 = vld [vmem:[%s286_s0 + $0x38] sm:$0xff] }
   0x5   :  { %v163_v30 = vld [vmem:[%s287_s3] ss:$0 sm:$0xff] }
   0x6   :  { %v33_v5 = vsub.f32 %v31_v3, %v32_v4  ;;  %v39_v13 = vrot.slane %v29_v1, %v38_v10  ;;  %v164_v35 = vld [vmem:[%s288_s4] ss:$0 sm:$0xff] }
   0x8   :  { %v34_v6 = vmax.f32 %v33_v5, 0.0  ;;  %v41_v20 = vsub.f32 %v20_v11, %v39_v13  ;;  %v42_v21 = vsub.f32 %v21_v12, %v39_v13  ;;  %v43_v22 = vsub.f32 %v22_v14, %v39_v13 }
   0x9   :  { %v44_v23 = vsub.f32 %v23_v15, %v39_v13  ;;  %v45_v25 = vsub.f32 %v24_v16, %v39_v13  ;;  %v46_v26 = vsub.f32 %v25_v17, %v39_v13  ;;  %v47_v27 = vsub.f32 %v26_v18, %v39_v13 }
   0xa   :  { %v49_v8 = vadd.f32 1e-05, %v34_v6  ;;  %v48_v28 = vsub.f32 %v27_v19, %v39_v13 }
   0xc   :  { %204 = vrsqrt.f32 %v49_v8 }
  0x19   :  { %v205_v24 = vpop.eup %204 }
  0x1a   :  { %v55_v29 = vrot.slane %v205_v24, %v38_v10 }
  0x1c   :  { %v57_v31 = vmul.f32 %v55_v29, %v41_v20  ;;  %v58_v32 = vmul.f32 %v55_v29, %v42_v21  ;;  %v59_v33 = vmul.f32 %v55_v29, %v43_v22  ;;  %v60_v34 = vmul.f32 %v55_v29, %v44_v23 }
  0x1d   :  { %v61_v36 = vmul.f32 %v55_v29, %v45_v25  ;;  %v62_v37 = vmul.f32 %v55_v29, %v46_v26  ;;  %v63_v38 = vmul.f32 %v55_v29, %v47_v27  ;;  %v64_v39 = vmul.f32 %v55_v29, %v48_v28 }
  0x1e   :  { %v72_v40 = vmul.f32 %v163_v30, %v57_v31  ;;  %v73_v41 = vmul.f32 %v163_v30, %v58_v32  ;;  %v74_v42 = vmul.f32 %v163_v30, %v59_v33  ;;  %v75_v43 = vmul.f32 %v163_v30, %v60_v34 }
  0x1f   :  { %v76_v44 = vmul.f32 %v163_v30, %v61_v36  ;;  %v77_v45 = vmul.f32 %v163_v30, %v62_v37  ;;  %v78_v46 = vmul.f32 %v163_v30, %v63_v38  ;;  %v79_v47 = vmul.f32 %v163_v30, %v64_v39 }
  0x20   :  { %v87_v48 = vadd.f32 %v164_v35, %v72_v40  ;;  %v88_v49 = vadd.f32 %v164_v35, %v73_v41  ;;  %v89_v50 = vadd.f32 %v164_v35, %v74_v42  ;;  %v90_v51 = vadd.f32 %v164_v35, %v75_v43 }
  0x21   :  { %v91_v52 = vadd.f32 %v164_v35, %v76_v44  ;;  %v92_v53 = vadd.f32 %v164_v35, %v77_v45  ;;  %v93_v54 = vadd.f32 %v164_v35, %v78_v46  ;;  %v94_v55 = vadd.f32 %v164_v35, %v79_v47 }
  0x22   :  { %vm95_vm0 = vcmp.gt.f32.partialorder %v87_v48, 0.0  ;;  %vm96_vm1 = vcmp.gt.f32.partialorder %v88_v49, 0.0  ;;  %v103_v56 = vmul.f32 0.2, %v87_v48  ;;  %v104_v57 = vmul.f32 0.2, %v88_v49 }
  0x23   :  { %vm97_vm2 = vcmp.gt.f32.partialorder %v89_v50, 0.0  ;;  %vm98_vm3 = vcmp.gt.f32.partialorder %v90_v51, 0.0  ;;  %v105_v58 = vmul.f32 0.2, %v89_v50  ;;  %v106_v59 = vmul.f32 0.2, %v90_v51 }
  0x24   :  { %v111_v60 = vsel %vm95_vm0, %v87_v48, %v103_v56  ;;  %v112_v61 = vsel %vm96_vm1, %v88_v49, %v104_v57  ;;  %vm99_vm4 = vcmp.gt.f32.partialorder %v91_v52, 0.0  ;;  %vm100_vm5 = vcmp.gt.f32.partialorder %v92_v53, 0.0 }
  0x25   :  { %v184_v62 = vpack.c.bf16 %v112_v61, %v111_v60  ;;  %v113_v63 = vsel %vm97_vm2, %v89_v50, %v105_v58  ;;  %v114_v0 = vsel %vm98_vm3, %v90_v51, %v106_v59  ;;  %v107_v1 = vmul.f32 0.2, %v91_v52 }
  0x26   :  { %v189_v2 = vpack.c.bf16 %v114_v0, %v113_v63  ;;  %v108_v3 = vmul.f32 0.2, %v92_v53  ;;  %vm101_vm6 = vcmp.gt.f32.partialorder %v93_v54, 0.0  ;;  %vm102_vm7 = vcmp.gt.f32.partialorder %v94_v55, 0.0 }
  0x27   :  { %185 = vst [vmem:[%s289_s5] sm:$0xff] %v184_v62   ;;  %v115_v4 = vsel %vm99_vm4, %v91_v52, %v107_v1  ;;  %v109_v5 = vmul.f32 0.2, %v93_v54  ;;  %v110_v6 = vmul.f32 0.2, %v94_v55 }
  0x28   :  { %201 = vst [vmem:[%s289_s5 + $0x8] sm:$0xff] %v189_v2   ;;  %v116_v7 = vsel %vm100_vm5, %v92_v53, %v108_v3 }
  0x29   :  { %v194_v8 = vpack.c.bf16 %v116_v7, %v115_v4  ;;  %v117_v9 = vsel %vm101_vm6, %v93_v54, %v109_v5  ;;  %v118_v10 = vsel %vm102_vm7, %v94_v55, %v110_v6 }
  0x2a   :  { %v199_v11 = vpack.c.bf16 %v118_v10, %v117_v9 }
  0x2b   :  { %202 = vst [vmem:[%s289_s5 + $0x10] sm:$0xff] %v194_v8  }
  0x2c   :  { %203 = vst [vmem:[%s289_s5 + $0x18] sm:$0xff] %v199_v11  }

// kernel: _lambda_.11
= control target key start
LH: loop header
LB: loop body
LE: loop exit
PB: predicated region body
PF: predicated region fallthrough
CT: control target
= control target key end

     0   :  { %v367_v12 = vmov 0.0   ;;  %s471_s1 = inlined_call_operand.vmem [shape: bf16[128,128], index: 1, kind: input, shape index: {}]   ;;  %s472_s0 = inlined_call_operand.vmem [shape: bf16[64,128], index: 0, kind: input, shape index: {}]   ;;  %s473_s3 = inlined_call_operand.vmem [shape: f32[1,128], index: 3, kind: output, shape index: {1}]   ;;  %s474_s4 = inlined_call_operand.vmem [shape: f32[1,128], index: 4, kind: output, shape index: {2}]   ;;  %s475_s2 = inlined_call_operand.vmem [shape: f32[64,128], index: 2, kind: output, shape index: {0}]  }
   0x1   :  { %v355_v0 = vld [vmem:[%s471_s1 + $0x38] sm:$0xff]   ;;  %v356_v1 = vld [vmem:[%s471_s1 + $0x30] sm:$0xff]   ;;  %v357_v2 = vld [vmem:[%s471_s1 + $0x28] sm:$0xff]   ;;  %217 = vst [vmem:[%s473_s3] sm:$0x1] %v367_v12 }
   0x2   :  { %314 = vmatprep.subr.bf16.mxu0 %v355_v0  ;;  %338 = vmatprep.subr.bf16.mxu1 %v355_v0  ;;  %v358_v3 = vld [vmem:[%s471_s1 + $0x20] sm:$0xff]   ;;  %v365_v5 = vld [vmem:[%s472_s0 + $0x10] sm:$0xff]   ;;  %v359_v6 = vld [vmem:[%s471_s1 + $0x18] sm:$0xff]   ;;  %218 = vst [vmem:[%s474_s4] sm:$0x1] %v367_v12 }
   0x3   :  { %315 = vmatpush3.bf16.msra.mxu0 %v355_v0  ;;  %346 = vmatpush3.bf16.msra.mxu1 %v355_v0  ;;  %v363_v4 = vld [vmem:[%s472_s0] sm:$0xff]   ;;  %v360_v7 = vld [vmem:[%s471_s1 + $0x10] sm:$0xff]   ;;  %v361_v8 = vld [vmem:[%s471_s1 + $0x8] sm:$0xff]  }
   0x4   :  { %316 = vmatprep.subr.bf16.mxu0 %v356_v1  ;;  %339 = vmatprep.subr.bf16.mxu1 %v356_v1  ;;  %v362_v9 = vld [vmem:[%s471_s1] sm:$0xff]   ;;  %v364_v10 = vld [vmem:[%s472_s0 + $0x8] sm:$0xff]   ;;  %v366_v11 = vld [vmem:[%s472_s0 + $0x18] sm:$0xff]  }
   0x5   :  { %330 = vmatprep.mubr.bf16.mxu0 %v363_v4  ;;  %334 = vmatprep.mubr.bf16.mxu1 %v365_v5 }
   0x7   :  { %317 = vmatpush3.bf16.msra.mxu0 %v356_v1  ;;  %347 = vmatpush3.bf16.msra.mxu1 %v356_v1 }
   0x8   :  { %318 = vmatprep.subr.bf16.mxu0 %v357_v2  ;;  %340 = vmatprep.subr.bf16.mxu1 %v357_v2  ;;  %v238_v52 = vld [vmem:[%s473_s3] sm:$0x1] }
   0x9   :  { %v254_v55 = vld [vmem:[%s474_s4] sm:$0x1] }
   0xb   :  { %319 = vmatpush3.bf16.msra.mxu0 %v357_v2  ;;  %348 = vmatpush3.bf16.msra.mxu1 %v357_v2 }
   0xc   :  { %320 = vmatprep.subr.bf16.mxu0 %v358_v3  ;;  %341 = vmatprep.subr.bf16.mxu1 %v358_v3 }
   0xf   :  { %321 = vmatpush3.bf16.msra.mxu0 %v358_v3  ;;  %349 = vmatpush3.bf16.msra.mxu1 %v358_v3 }
  0x10   :  { %322 = vmatprep.subr.bf16.mxu0 %v359_v6  ;;  %342 = vmatprep.subr.bf16.mxu1 %v359_v6 }
  0x13   :  { %323 = vmatpush3.bf16.msra.mxu0 %v359_v6  ;;  %350 = vmatpush3.bf16.msra.mxu1 %v359_v6 }
  0x14   :  { %324 = vmatprep.subr.bf16.mxu0 %v360_v7  ;;  %343 = vmatprep.subr.bf16.mxu1 %v360_v7 }
  0x17   :  { %325 = vmatpush3.bf16.msra.mxu0 %v360_v7  ;;  %351 = vmatpush3.bf16.msra.mxu1 %v360_v7 }
  0x18   :  { %326 = vmatprep.subr.bf16.mxu0 %v361_v8  ;;  %344 = vmatprep.subr.bf16.mxu1 %v361_v8 }
  0x1b   :  { %327 = vmatpush3.bf16.msra.mxu0 %v361_v8  ;;  %352 = vmatpush3.bf16.msra.mxu1 %v361_v8 }
  0x1c   :  { %328 = vmatprep.subr.bf16.mxu0 %v362_v9  ;;  %345 = vmatprep.subr.bf16.mxu1 %v362_v9 }
  0x1f   :  { %329 = vmatpush3.bf16.msra.mxu0 %v362_v9  ;;  %353 = vmatpush3.bf16.msra.mxu1 %v362_v9 }
  0x22   :  { %331 = vmatmul.mubr.bf16.vlgmr.msra.gmra.mxu0 %v364_v10  ;;  %335 = vmatmul.mubr.bf16.vlgmr.msra.gmra.mxu1 %v366_v11 }
  0xe2   :  { %v332_v13 = vpop.f32.mrf.mxu0  ;;  %v336_v14 = vpop.f32.mrf.mxu1 }
  0xe3   :  { %232 = vst [vmem:[%s475_s2 + $0x10] sm:$0xff] %v332_v13  ;;  %236 = vst [vmem:[%s475_s2 + $0x30] sm:$0xff] %v336_v14  ;;  %v257_v24 = vmul.f32 %v332_v13, %v332_v13  ;;  %v261_v36 = vmul.f32 %v336_v14, %v336_v14 }
  0xe4   :  { %v165_v15 = vpop.f32.mrf.mxu0  ;;  %v181_v16 = vpop.f32.mrf.mxu1 }
  0xe5   :  { %230 = vst [vmem:[%s475_s2] sm:$0xff] %v165_v15  ;;  %234 = vst [vmem:[%s475_s2 + $0x20] sm:$0xff] %v181_v16  ;;  %v255_v21 = vmul.f32 %v165_v15, %v165_v15  ;;  %v259_v30 = vmul.f32 %v181_v16, %v181_v16 }
  0xe6   :  { %v333_v17 = vpop.f32.mrf.mxu0  ;;  %v337_v18 = vpop.f32.mrf.mxu1 }
  0xe7   :  { %233 = vst [vmem:[%s475_s2 + $0x18] sm:$0xff] %v333_v17  ;;  %237 = vst [vmem:[%s475_s2 + $0x38] sm:$0xff] %v337_v18  ;;  %v258_v27 = vmul.f32 %v333_v17, %v333_v17  ;;  %v262_v39 = vmul.f32 %v337_v18, %v337_v18 }
  0xe8   :  { %v168_v19 = vpop.f32.mrf.mxu0  ;;  %v184_v20 = vpop.f32.mrf.mxu1 }
  0xe9   :  { %231 = vst [vmem:[%s475_s2 + $0x8] sm:$0xff] %v168_v19  ;;  %v239_v22 = vadd.f32 %v168_v19, %v165_v15  ;;  %v256_v23 = vmul.f32 %v168_v19, %v168_v19  ;;  %235 = vst [vmem:[%s475_s2 + $0x28] sm:$0xff] %v184_v20  ;;  %v260_v34 = vmul.f32 %v184_v20, %v184_v20 }
  0xeb   :  { %v240_v25 = vadd.f32 %v332_v13, %v239_v22  ;;  %v263_v26 = vadd.f32 %v256_v23, %v255_v21 }
  0xed   :  { %v264_v28 = vadd.f32 %v263_v26, %v257_v24  ;;  %v241_v29 = vadd.f32 %v333_v17, %v240_v25 }
  0xef   :  { %v242_v31 = vadd.f32 %v241_v29, %v181_v16  ;;  %v265_v32 = vadd.f32 %v264_v28, %v258_v27 }
  0xf1   :  { %v243_v33 = vadd.f32 %v242_v31, %v184_v20  ;;  %v266_v35 = vadd.f32 %v265_v32, %v259_v30 }
  0xf3   :  { %v244_v37 = vadd.f32 %v336_v14, %v243_v33  ;;  %v267_v38 = vadd.f32 %v266_v35, %v260_v34 }
  0xf5   :  { %v245_v40 = vadd.f32 %v337_v18, %v244_v37  ;;  %v268_v41 = vadd.f32 %v267_v38, %v261_v36 }
  0xf7   :  { %v246_v42 = vrot.slane %v245_v40, 4  ;;  %v269_v43 = vadd.f32 %v268_v41, %v262_v39 }
  0xf9   :  { %v247_v44 = vadd.f32 %v246_v42, %v245_v40  ;;  %v270_v45 = vrot.slane %v269_v43, 4 }
  0xfb   :  { %v248_v46 = vrot.slane %v247_v44, 2  ;;  %v271_v47 = vadd.f32 %v270_v45, %v269_v43 }
  0xfd   :  { %v249_v48 = vadd.f32 %v248_v46, %v247_v44  ;;  %v272_v49 = vrot.slane %v271_v47, 2 }
  0xff   :  { %v250_v50 = vrot.slane %v249_v48, 1  ;;  %v273_v51 = vadd.f32 %v272_v49, %v271_v47 }
 0x101   :  { %v251_v53 = vadd.f32 %v250_v50, %v249_v48  ;;  %v274_v54 = vrot.slane %v273_v51, 1 }
 0x103   :  { %v252_v56 = vadd.f32 %v251_v53, %v238_v52  ;;  %v275_v57 = vadd.f32 %v274_v54, %v273_v51 }
 0x105   :  { %253 = vst [vmem:[%s473_s3] sm:$0x1] %v252_v56  ;;  %v276_v58 = vadd.f32 %v275_v57, %v254_v55 }
 0x107   :  { %277 = vst [vmem:[%s474_s4] sm:$0x1] %v276_v58 }

// kernel: _lambda_.13
= control target key start
LH: loop header
LB: loop body
LE: loop exit
PB: predicated region body
PF: predicated region fallthrough
CT: control target
= control target key end

     0   :  { %v381_v20 = vmov 0.0   ;;  %s497_s1 = inlined_call_operand.vmem [shape: bf16[256,128], index: 1, kind: input, shape index: {}]   ;;  %s498_s0 = inlined_call_operand.vmem [shape: bf16[32,256], index: 0, kind: input, shape index: {}]   ;;  %s499_s3 = inlined_call_operand.vmem [shape: f32[1,128], index: 3, kind: output, shape index: {1}]   ;;  %s500_s4 = inlined_call_operand.vmem [shape: f32[1,128], index: 4, kind: output, shape index: {2}]   ;;  %s501_s2 = inlined_call_operand.vmem [shape: f32[32,128], index: 2, kind: output, shape index: {0}]  }
   0x1   :  { %v359_v0 = vld [vmem:[%s497_s1 + $0x78] sm:$0xff]   ;;  %v361_v2 = vld [vmem:[%s497_s1 + $0x70] sm:$0xff]   ;;  %v363_v4 = vld [vmem:[%s497_s1 + $0x68] sm:$0xff]   ;;  %241 = vst [vmem:[%s499_s3] sm:$0x1] %v381_v20 }
   0x2   :  { %v360_v1 = vld [vmem:[%s497_s1 + $0x38] sm:$0xff]   ;;  %314 = vmatprep.subr.bf16.mxu0 %v359_v0  ;;  %342 = vmatprep.subr.bf16.mxu1 %v359_v0  ;;  %v362_v3 = vld [vmem:[%s497_s1 + $0x30] sm:$0xff]   ;;  %v364_v5 = vld [vmem:[%s497_s1 + $0x28] sm:$0xff]   ;;  %242 = vst [vmem:[%s500_s4] sm:$0x1] %v381_v20 }
   0x3   :  { %315 = vmatpush3.bf16.msra.mxu0 %v360_v1  ;;  %350 = vmatpush3.bf16.msra.mxu1 %v360_v1  ;;  %v365_v6 = vld [vmem:[%s497_s1 + $0x60] sm:$0xff]   ;;  %v367_v8 = vld [vmem:[%s497_s1 + $0x58] sm:$0xff]   ;;  %v369_v10 = vld [vmem:[%s497_s1 + $0x50] sm:$0xff]  }
   0x4   :  { %316 = vmatprep.subr.bf16.mxu0 %v361_v2  ;;  %343 = vmatprep.subr.bf16.mxu1 %v361_v2  ;;  %v366_v7 = vld [vmem:[%s497_s1 + $0x20] sm:$0xff]   ;;  %v368_v9 = vld [vmem:[%s497_s1 + $0x18] sm:$0xff]   ;;  %v370_v13 = vld [vmem:[%s497_s1 + $0x10] sm:$0xff]  }
   0x5   :  { %v377_v11 = vld [vmem:[%s498_s0 + $0x4] ss:$8 sps:$4 sm:$0xff]   ;;  %v380_v12 = vld [vmem:[%s498_s0 + $0x14] ss:$8 sps:$4 sm:$0xff]   ;;  %v375_v18 = vld [vmem:[%s498_s0] ss:$8 sps:$4 sm:$0xff]  }
   0x6   :  { %v371_v14 = vld [vmem:[%s497_s1 + $0x48] sm:$0xff]   ;;  %211 = vmatprep.mubr.bf16.mxu0 %v377_v11  ;;  %219 = vmatprep.mubr.bf16.mxu1 %v380_v12  ;;  %v373_v16 = vld [vmem:[%s497_s1 + $0x40] sm:$0xff]   ;;  %v378_v19 = vld [vmem:[%s498_s0 + $0x10] ss:$8 sps:$4 sm:$0xff]  }
   0x7   :  { %317 = vmatpush3.bf16.msra.mxu0 %v362_v3  ;;  %351 = vmatpush3.bf16.msra.mxu1 %v362_v3  ;;  %v372_v15 = vld [vmem:[%s497_s1 + $0x8] sm:$0xff]   ;;  %v374_v17 = vld [vmem:[%s497_s1] sm:$0xff]  }
   0x8   :  { %318 = vmatprep.subr.bf16.mxu0 %v363_v4  ;;  %344 = vmatprep.subr.bf16.mxu1 %v363_v4  ;;  %v254_v52 = vld [vmem:[%s499_s3] sm:$0x1] }
   0x9   :  { %v266_v55 = vld [vmem:[%s500_s4] sm:$0x1] }
   0xb   :  { %319 = vmatpush3.bf16.msra.mxu0 %v364_v5  ;;  %352 = vmatpush3.bf16.msra.mxu1 %v364_v5 }
   0xc   :  { %320 = vmatprep.subr.bf16.mxu0 %v365_v6  ;;  %345 = vmatprep.subr.bf16.mxu1 %v365_v6 }
   0xf   :  { %321 = vmatpush3.bf16.msra.mxu0 %v366_v7  ;;  %353 = vmatpush3.bf16.msra.mxu1 %v366_v7 }
  0x10   :  { %322 = vmatprep.subr.bf16.mxu0 %v367_v8  ;;  %346 = vmatprep.subr.bf16.mxu1 %v367_v8 }
  0x13   :  { %323 = vmatpush3.bf16.msra.mxu0 %v368_v9  ;;  %354 = vmatpush3.bf16.msra.mxu1 %v368_v9 }
  0x14   :  { %324 = vmatprep.subr.bf16.mxu0 %v369_v10  ;;  %347 = vmatprep.subr.bf16.mxu1 %v369_v10 }
  0x17   :  { %325 = vmatpush3.bf16.msra.mxu0 %v370_v13  ;;  %355 = vmatpush3.bf16.msra.mxu1 %v370_v13 }
  0x18   :  { %326 = vmatprep.subr.bf16.mxu0 %v371_v14  ;;  %348 = vmatprep.subr.bf16.mxu1 %v371_v14 }
  0x1b   :  { %327 = vmatpush3.bf16.msra.mxu0 %v372_v15  ;;  %356 = vmatpush3.bf16.msra.mxu1 %v372_v15 }
  0x1c   :  { %328 = vmatprep.subr.bf16.mxu0 %v373_v16  ;;  %349 = vmatprep.subr.bf16.mxu1 %v373_v16 }
  0x1f   :  { %329 = vmatpush3.bf16.msra.mxu0 %v374_v17  ;;  %357 = vmatpush3.bf16.msra.mxu1 %v374_v17 }
  0x22   :  { %212 = vmatmul.mubr.bf16.vlgmr.msra.gmra.mxu0 %v375_v18  ;;  %220 = vmatmul.mubr.bf16.vlgmr.msra.gmra.mxu1 %v378_v19 }
  0xe2   :  { %v330_v21 = vpop.f32.mrf.mxu0  ;;  %v336_v22 = vpop.f32.mrf.mxu1 }
  0xe4   :  { %v331_v23 = vpop.f32.mrf.mxu0  ;;  %v337_v24 = vpop.f32.mrf.mxu1 }
  0xe5   :  { %v332_v25 = vadd.f32 %v331_v23, %v330_v21  ;;  %v338_v26 = vadd.f32 %v337_v24, %v336_v22 }
  0xe6   :  { %v333_v27 = vpop.f32.mrf.mxu0  ;;  %v339_v28 = vpop.f32.mrf.mxu1 }
  0xe7   :  { %250 = vst [vmem:[%s501_s2] sm:$0xff] %v332_v25  ;;  %252 = vst [vmem:[%s501_s2 + $0x10] sm:$0xff] %v338_v26  ;;  %v267_v33 = vmul.f32 %v332_v25, %v332_v25  ;;  %v269_v36 = vmul.f32 %v338_v26, %v338_v26 }
  0xe8   :  { %v334_v29 = vpop.f32.mrf.mxu0  ;;  %v340_v30 = vpop.f32.mrf.mxu1 }
  0xe9   :  { %v335_v31 = vadd.f32 %v334_v29, %v333_v27  ;;  %v341_v32 = vadd.f32 %v340_v30, %v339_v28 }
  0xeb   :  { %251 = vst [vmem:[%s501_s2 + $0x8] sm:$0xff] %v335_v31  ;;  %v255_v34 = vadd.f32 %v335_v31, %v332_v25  ;;  %v268_v35 = vmul.f32 %v335_v31, %v335_v31  ;;  %253 = vst [vmem:[%s501_s2 + $0x18] sm:$0xff] %v341_v32  ;;  %v270_v40 = vmul.f32 %v341_v32, %v341_v32 }
  0xed   :  { %v271_v37 = vadd.f32 %v268_v35, %v267_v33  ;;  %v256_v38 = vadd.f32 %v338_v26, %v255_v34 }
  0xef   :  { %v257_v39 = vadd.f32 %v341_v32, %v256_v38  ;;  %v272_v41 = vadd.f32 %v271_v37, %v269_v36 }
  0xf1   :  { %v258_v42 = vrot.slane %v257_v39, 4  ;;  %v273_v43 = vadd.f32 %v272_v41, %v270_v40 }
  0xf3   :  { %v259_v44 = vadd.f32 %v258_v42, %v257_v39  ;;  %v274_v45 = vrot.slane %v273_v43, 4 }
  0xf5   :  { %v260_v46 = vrot.slane %v259_v44, 2  ;;  %v275_v47 = vadd.f32 %v274_v45, %v273_v43 }
  0xf7   :  { %v261_v48 = vadd.f32 %v260_v46, %v259_v44  ;;  %v276_v49 = vrot.slane %v275_v47, 2 }
  0xf9   :  { %v262_v50 = vrot.slane %v261_v48, 1  ;;  %v277_v51 = vadd.f32 %v276_v49, %v275_v47 }
  0xfb   :  { %v263_v53 = vadd.f32 %v262_v50, %v261_v48  ;;  %v278_v54 = vrot.slane %v277_v51, 1 }
  0xfd   :  { %v264_v56 = vadd.f32 %v263_v53, %v254_v52  ;;  %v279_v57 = vadd.f32 %v278_v54, %v277_v51 }
  0xff   :  { %265 = vst [vmem:[%s499_s3] sm:$0x1] %v264_v56  ;;  %v280_v58 = vadd.f32 %v279_v57, %v266_v55 }
 0x101   :  { %281 = vst [vmem:[%s500_s4] sm:$0x1] %v280_v58 }

// kernel: _lambda_.14
= control target key start
LH: loop header
LB: loop body
LE: loop exit
PB: predicated region body
PF: predicated region fallthrough
CT: control target
= control target key end

     0   :  { %v32_v7 = vlaneseq  ;;  %s194_s1 = inlined_call_operand.vmem [shape: f32[1,128], index: 1, kind: input, shape index: {}]   ;;  %s195_s2 = inlined_call_operand.vmem [shape: f32[1,128], index: 2, kind: input, shape index: {}]   ;;  %s196_s0 = inlined_call_operand.vmem [shape: f32[32,128], index: 0, kind: input, shape index: {}]   ;;  %s197_s3 = inlined_call_operand.vmem [shape: f32[1,128], index: 3, kind: input, shape index: {}]   ;;  %s198_s4 = inlined_call_operand.vmem [shape: f32[1,128], index: 4, kind: input, shape index: {}]   ;;  %s199_s5 = inlined_call_operand.vmem [shape: bf16[32,128], index: 5, kind: output, shape index: {}]  }
   0x1   :  { %v24_v0 = vld [vmem:[%s194_s1] sm:$0x1]  ;;  %v21_v13 = vld [vmem:[%s196_s0 + $0x8] sm:$0xff]  ;;  %v22_v14 = vld [vmem:[%s196_s0 + $0x10] sm:$0xff] }
   0x2   :  { %v25_v1 = vmul.f32 0.055555556, %v24_v0  ;;  %v26_v2 = vld [vmem:[%s195_s2] sm:$0x1]  ;;  %v33_v9 = vshrl.u32 %v32_v7, 7  ;;  %v23_v15 = vld [vmem:[%s196_s0 + $0x18] sm:$0xff] }
   0x3   :  { %v27_v3 = vmul.f32 0.055555556, %v26_v2  ;;  %v20_v11 = vld [vmem:[%s196_s0] sm:$0xff] }
   0x4   :  { %v28_v4 = vmul.f32 %v25_v1, %v25_v1  ;;  %v34_v10 = vsub.s32 0, %v33_v9  ;;  %v111_v22 = vld [vmem:[%s197_s3] ss:$0 sm:$0xff] }
   0x5   :  { %v112_v27 = vld [vmem:[%s198_s4] ss:$0 sm:$0xff] }
   0x6   :  { %v29_v5 = vsub.f32 %v27_v3, %v28_v4  ;;  %v35_v12 = vrot.slane %v25_v1, %v34_v10 }
   0x8   :  { %v30_v6 = vmax.f32 %v29_v5, 0.0  ;;  %v37_v16 = vsub.f32 %v20_v11, %v35_v12  ;;  %v38_v17 = vsub.f32 %v21_v13, %v35_v12  ;;  %v39_v18 = vsub.f32 %v22_v14, %v35_v12 }
   0x9   :  { %v40_v19 = vsub.f32 %v23_v15, %v35_v12 }
   0xa   :  { %v41_v8 = vadd.f32 1e-05, %v30_v6 }
   0xc   :  { %132 = vrsqrt.f32 %v41_v8 }
  0x19   :  { %v133_v20 = vpop.eup %132 }
  0x1a   :  { %v47_v21 = vrot.slane %v133_v20, %v34_v10 }
  0x1c   :  { %v49_v23 = vmul.f32 %v47_v21, %v37_v16  ;;  %v50_v24 = vmul.f32 %v47_v21, %v38_v17  ;;  %v51_v25 = vmul.f32 %v47_v21, %v39_v18  ;;  %v52_v26 = vmul.f32 %v47_v21, %v40_v19 }
  0x1e   :  { %v60_v28 = vmul.f32 %v111_v22, %v49_v23  ;;  %v61_v29 = vmul.f32 %v111_v22, %v50_v24  ;;  %v62_v30 = vmul.f32 %v111_v22, %v51_v25  ;;  %v63_v31 = vmul.f32 %v111_v22, %v52_v26 }
  0x20   :  { %v71_v32 = vadd.f32 %v112_v27, %v60_v28  ;;  %v72_v33 = vadd.f32 %v112_v27, %v61_v29  ;;  %v73_v34 = vadd.f32 %v112_v27, %v62_v30  ;;  %v74_v35 = vadd.f32 %v112_v27, %v63_v31 }
  0x22   :  { %vm75_vm0 = vcmp.gt.f32.partialorder %v71_v32, 0.0  ;;  %vm76_vm1 = vcmp.gt.f32.partialorder %v72_v33, 0.0  ;;  %v79_v36 = vmul.f32 0.2, %v71_v32  ;;  %v80_v37 = vmul.f32 0.2, %v72_v33 }
  0x23   :  { %vm77_vm2 = vcmp.gt.f32.partialorder %v73_v34, 0.0  ;;  %vm78_vm3 = vcmp.gt.f32.partialorder %v74_v35, 0.0  ;;  %v81_v38 = vmul.f32 0.2, %v73_v34  ;;  %v82_v39 = vmul.f32 0.2, %v74_v35 }
  0x24   :  { %v83_v40 = vsel %vm75_vm0, %v71_v32, %v79_v36  ;;  %v84_v41 = vsel %vm76_vm1, %v72_v33, %v80_v37 }
  0x25   :  { %v124_v42 = vpack.c.bf16 %v84_v41, %v83_v40  ;;  %v85_v43 = vsel %vm77_vm2, %v73_v34, %v81_v38  ;;  %v86_v44 = vsel %vm78_vm3, %v74_v35, %v82_v39 }
  0x26   :  { %v129_v45 = vpack.c.bf16 %v86_v44, %v85_v43 }
  0x27   :  { %125 = vst [vmem:[%s199_s5] sm:$0xff] %v124_v42  }
  0x28   :  { %131 = vst [vmem:[%s199_s5 + $0x8] sm:$0xff] %v129_v45  }

// kernel: _lambda_.16
= control target key start
LH: loop header
LB: loop body
LE: loop exit
PB: predicated region body
PF: predicated region fallthrough
CT: control target
= control target key end

     0   :  { %v32_v7 = vlaneseq  ;;  %s194_s1 = inlined_call_operand.vmem [shape: f32[1,128], index: 1, kind: input, shape index: {}]   ;;  %s195_s2 = inlined_call_operand.vmem [shape: f32[1,128], index: 2, kind: input, shape index: {}]   ;;  %s196_s0 = inlined_call_operand.vmem [shape: f32[32,128], index: 0, kind: input, shape index: {}]   ;;  %s197_s3 = inlined_call_operand.vmem [shape: f32[1,128], index: 3, kind: input, shape index: {}]   ;;  %s198_s4 = inlined_call_operand.vmem [shape: f32[1,128], index: 4, kind: input, shape index: {}]   ;;  %s199_s5 = inlined_call_operand.vmem [shape: bf16[32,128], index: 5, kind: output, shape index: {}]  }
   0x1   :  { %v24_v0 = vld [vmem:[%s194_s1] sm:$0x1]  ;;  %v21_v13 = vld [vmem:[%s196_s0 + $0x8] sm:$0xff]  ;;  %v22_v14 = vld [vmem:[%s196_s0 + $0x10] sm:$0xff] }
   0x2   :  { %v25_v1 = vmul.f32 0.03125, %v24_v0  ;;  %v26_v2 = vld [vmem:[%s195_s2] sm:$0x1]  ;;  %v33_v9 = vshrl.u32 %v32_v7, 7  ;;  %v23_v15 = vld [vmem:[%s196_s0 + $0x18] sm:$0xff] }
   0x3   :  { %v27_v3 = vmul.f32 0.03125, %v26_v2  ;;  %v20_v11 = vld [vmem:[%s196_s0] sm:$0xff] }
   0x4   :  { %v28_v4 = vmul.f32 %v25_v1, %v25_v1  ;;  %v34_v10 = vsub.s32 0, %v33_v9  ;;  %v111_v22 = vld [vmem:[%s197_s3] ss:$0 sm:$0xff] }
   0x5   :  { %v112_v27 = vld [vmem:[%s198_s4] ss:$0 sm:$0xff] }
   0x6   :  { %v29_v5 = vsub.f32 %v27_v3, %v28_v4  ;;  %v35_v12 = vrot.slane %v25_v1, %v34_v10 }
   0x8   :  { %v30_v6 = vmax.f32 %v29_v5, 0.0  ;;  %v37_v16 = vsub.f32 %v20_v11, %v35_v12  ;;  %v38_v17 = vsub.f32 %v21_v13, %v35_v12  ;;  %v39_v18 = vsub.f32 %v22_v14, %v35_v12 }
   0x9   :  { %v40_v19 = vsub.f32 %v23_v15, %v35_v12 }
   0xa   :  { %v41_v8 = vadd.f32 1e-05, %v30_v6 }
   0xc   :  { %132 = vrsqrt.f32 %v41_v8 }
  0x19   :  { %v133_v20 = vpop.eup %132 }
  0x1a   :  { %v47_v21 = vrot.slane %v133_v20, %v34_v10 }
  0x1c   :  { %v49_v23 = vmul.f32 %v47_v21, %v37_v16  ;;  %v50_v24 = vmul.f32 %v47_v21, %v38_v17  ;;  %v51_v25 = vmul.f32 %v47_v21, %v39_v18  ;;  %v52_v26 = vmul.f32 %v47_v21, %v40_v19 }
  0x1e   :  { %v60_v28 = vmul.f32 %v111_v22, %v49_v23  ;;  %v61_v29 = vmul.f32 %v111_v22, %v50_v24  ;;  %v62_v30 = vmul.f32 %v111_v22, %v51_v25  ;;  %v63_v31 = vmul.f32 %v111_v22, %v52_v26 }
  0x20   :  { %v71_v32 = vadd.f32 %v112_v27, %v60_v28  ;;  %v72_v33 = vadd.f32 %v112_v27, %v61_v29  ;;  %v73_v34 = vadd.f32 %v112_v27, %v62_v30  ;;  %v74_v35 = vadd.f32 %v112_v27, %v63_v31 }
  0x22   :  { %vm75_vm0 = vcmp.gt.f32.partialorder %v71_v32, 0.0  ;;  %vm76_vm1 = vcmp.gt.f32.partialorder %v72_v33, 0.0  ;;  %v79_v36 = vmul.f32 0.2, %v71_v32  ;;  %v80_v37 = vmul.f32 0.2, %v72_v33 }
  0x23   :  { %vm77_vm2 = vcmp.gt.f32.partialorder %v73_v34, 0.0  ;;  %vm78_vm3 = vcmp.gt.f32.partialorder %v74_v35, 0.0  ;;  %v81_v38 = vmul.f32 0.2, %v73_v34  ;;  %v82_v39 = vmul.f32 0.2, %v74_v35 }
  0x24   :  { %v83_v40 = vsel %vm75_vm0, %v71_v32, %v79_v36  ;;  %v84_v41 = vsel %vm76_vm1, %v72_v33, %v80_v37 }
  0x25   :  { %v124_v42 = vpack.c.bf16 %v84_v41, %v83_v40  ;;  %v85_v43 = vsel %vm77_vm2, %v73_v34, %v81_v38  ;;  %v86_v44 = vsel %vm78_vm3, %v74_v35, %v82_v39 }
  0x26   :  { %v129_v45 = vpack.c.bf16 %v86_v44, %v85_v43 }
  0x27   :  { %125 = vst [vmem:[%s199_s5] sm:$0xff] %v124_v42  }
  0x28   :  { %131 = vst [vmem:[%s199_s5 + $0x8] sm:$0xff] %v129_v45  }

// kernel: _lambda_.15
= control target key start
LH: loop header
LB: loop body
LE: loop exit
PB: predicated region body
PF: predicated region fallthrough
CT: control target
= control target key end

     0   :  { %v636_v40 = vmov 0.0   ;;  %s812_s1 = inlined_call_operand.vmem [shape: bf16[512,128], index: 1, kind: input, shape index: {}]   ;;  %s813_s0 = inlined_call_operand.vmem [shape: bf16[32,512], index: 0, kind: input, shape index: {}]   ;;  %s814_s3 = inlined_call_operand.vmem [shape: f32[1,128], index: 3, kind: output, shape index: {1}]   ;;  %s815_s4 = inlined_call_operand.vmem [shape: f32[1,128], index: 4, kind: output, shape index: {2}]   ;;  %s816_s2 = inlined_call_operand.vmem [shape: f32[32,128], index: 2, kind: output, shape index: {0}]  }
   0x1   :  { %v592_v0 = vld [vmem:[%s812_s1 + $0x78] sm:$0xff]   ;;  %v596_v4 = vld [vmem:[%s812_s1 + $0x70] sm:$0xff]   ;;  %v600_v8 = vld [vmem:[%s812_s1 + $0x68] sm:$0xff]   ;;  %442 = vst [vmem:[%s814_s3] sm:$0x1] %v636_v40 }
   0x2   :  { %v593_v1 = vld [vmem:[%s812_s1 + $0xf8] sm:$0xff]   ;;  %535 = vmatprep.subr.bf16.mxu0 %v592_v0  ;;  %v597_v5 = vld [vmem:[%s812_s1 + $0xf0] sm:$0xff]   ;;  %v601_v9 = vld [vmem:[%s812_s1 + $0xe8] sm:$0xff]   ;;  %443 = vst [vmem:[%s815_s4] sm:$0x1] %v636_v40 }
   0x3   :  { %v594_v2 = vld [vmem:[%s812_s1 + $0x38] sm:$0xff]   ;;  %563 = vmatprep.subr.bf16.mxu1 %v593_v1  ;;  %v598_v6 = vld [vmem:[%s812_s1 + $0x30] sm:$0xff]   ;;  %v602_v10 = vld [vmem:[%s812_s1 + $0x28] sm:$0xff]  }
   0x4   :  { %v595_v3 = vld [vmem:[%s812_s1 + $0xb8] sm:$0xff]   ;;  %536 = vmatpush3.bf16.msra.mxu0 %v594_v2  ;;  %v599_v7 = vld [vmem:[%s812_s1 + $0xb0] sm:$0xff]   ;;  %v603_v11 = vld [vmem:[%s812_s1 + $0xa8] sm:$0xff]  }
   0x5   :  { %564 = vmatpush3.bf16.msra.mxu1 %v595_v3  ;;  %537 = vmatprep.subr.bf16.mxu0 %v596_v4  ;;  %v604_v12 = vld [vmem:[%s812_s1 + $0x60] sm:$0xff]   ;;  %v608_v16 = vld [vmem:[%s812_s1 + $0x58] sm:$0xff]   ;;  %v612_v20 = vld [vmem:[%s812_s1 + $0x50] sm:$0xff]  }
   0x6   :  { %565 = vmatprep.subr.bf16.mxu1 %v597_v5  ;;  %v605_v13 = vld [vmem:[%s812_s1 + $0xe0] sm:$0xff]   ;;  %v609_v17 = vld [vmem:[%s812_s1 + $0xd8] sm:$0xff]   ;;  %v613_v21 = vld [vmem:[%s812_s1 + $0xd0] sm:$0xff]  }
   0x7   :  { %v606_v14 = vld [vmem:[%s812_s1 + $0x20] sm:$0xff]   ;;  %v610_v18 = vld [vmem:[%s812_s1 + $0x18] sm:$0xff]   ;;  %v614_v22 = vld [vmem:[%s812_s1 + $0x10] sm:$0xff]  }
   0x8   :  { %538 = vmatpush3.bf16.msra.mxu0 %v598_v6  ;;  %v607_v15 = vld [vmem:[%s812_s1 + $0xa0] sm:$0xff]   ;;  %v611_v19 = vld [vmem:[%s812_s1 + $0x98] sm:$0xff]   ;;  %v615_v23 = vld [vmem:[%s812_s1 + $0x90] sm:$0xff]  }
   0x9   :  { %566 = vmatpush3.bf16.msra.mxu1 %v599_v7  ;;  %539 = vmatprep.subr.bf16.mxu0 %v600_v8  ;;  %v616_v24 = vld [vmem:[%s812_s1 + $0x48] sm:$0xff]   ;;  %v620_v28 = vld [vmem:[%s812_s1 + $0x40] sm:$0xff]  }
   0xa   :  { %567 = vmatprep.subr.bf16.mxu1 %v601_v9  ;;  %v617_v25 = vld [vmem:[%s812_s1 + $0xc8] sm:$0xff]   ;;  %v621_v29 = vld [vmem:[%s812_s1 + $0xc0] sm:$0xff]  }
   0xb   :  { %v618_v26 = vld [vmem:[%s812_s1 + $0x8] sm:$0xff]   ;;  %v622_v30 = vld [vmem:[%s812_s1] sm:$0xff]  }
   0xc   :  { %540 = vmatpush3.bf16.msra.mxu0 %v602_v10  ;;  %v619_v27 = vld [vmem:[%s812_s1 + $0x88] sm:$0xff]   ;;  %v623_v31 = vld [vmem:[%s812_s1 + $0x80] sm:$0xff]  }
   0xd   :  { %568 = vmatpush3.bf16.msra.mxu1 %v603_v11  ;;  %541 = vmatprep.subr.bf16.mxu0 %v604_v12  ;;  %v624_v32 = vld [vmem:[%s813_s0] ss:$16 sps:$4 sm:$0xff]   ;;  %v626_v33 = vld [vmem:[%s813_s0 + $0x4] ss:$16 sps:$4 sm:$0xff]   ;;  %v627_v34 = vld [vmem:[%s813_s0 + $0x8] ss:$16 sps:$4 sm:$0xff]  }
   0xe   :  { %569 = vmatprep.subr.bf16.mxu1 %v605_v13  ;;  %v629_v35 = vld [vmem:[%s813_s0 + $0xc] ss:$16 sps:$4 sm:$0xff]   ;;  %363 = vmatprep.mubr.bf16.mxu0 %v626_v33  ;;  %v630_v36 = vld [vmem:[%s813_s0 + $0x24] ss:$16 sps:$4 sm:$0xff]   ;;  %v634_v38 = vld [vmem:[%s813_s0 + $0x20] ss:$16 sps:$4 sm:$0xff]  }
   0xf   :  { %412 = vmatprep.mubr.bf16.mxu1 %v629_v35  ;;  %v632_v37 = vld [vmem:[%s813_s0 + $0x2c] ss:$16 sps:$4 sm:$0xff]   ;;  %v635_v39 = vld [vmem:[%s813_s0 + $0x28] ss:$16 sps:$4 sm:$0xff]  }
  0x10   :  { %542 = vmatpush3.bf16.msra.mxu0 %v606_v14 }
  0x11   :  { %570 = vmatpush3.bf16.msra.mxu1 %v607_v15  ;;  %543 = vmatprep.subr.bf16.mxu0 %v608_v16 }
  0x12   :  { %571 = vmatprep.subr.bf16.mxu1 %v609_v17 }
  0x14   :  { %544 = vmatpush3.bf16.msra.mxu0 %v610_v18 }
  0x15   :  { %572 = vmatpush3.bf16.msra.mxu1 %v611_v19  ;;  %545 = vmatprep.subr.bf16.mxu0 %v612_v20 }
  0x16   :  { %573 = vmatprep.subr.bf16.mxu1 %v613_v21 }
  0x18   :  { %546 = vmatpush3.bf16.msra.mxu0 %v614_v22 }
  0x19   :  { %574 = vmatpush3.bf16.msra.mxu1 %v615_v23  ;;  %547 = vmatprep.subr.bf16.mxu0 %v616_v24  ;;  %v455_v24 = vld [vmem:[%s814_s3] sm:$0x1] }
  0x1a   :  { %575 = vmatprep.subr.bf16.mxu1 %v617_v25 }
  0x1c   :  { %548 = vmatpush3.bf16.msra.mxu0 %v618_v26 }
  0x1d   :  { %576 = vmatpush3.bf16.msra.mxu1 %v619_v27  ;;  %549 = vmatprep.subr.bf16.mxu0 %v620_v28  ;;  %v467_v27 = vld [vmem:[%s815_s4] sm:$0x1] }
  0x1e   :  { %577 = vmatprep.subr.bf16.mxu1 %v621_v29 }
  0x20   :  { %550 = vmatpush3.bf16.msra.mxu0 %v622_v30 }
  0x21   :  { %578 = vmatpush3.bf16.msra.mxu1 %v623_v31 }
  0x23   :  { %364 = vmatmul.mubr.bf16.vlgmr.msra.gmra.mxu0 %v624_v32 }
  0x24   :  { %413 = vmatmul.mubr.bf16.vlgmr.msra.gmra.mxu1 %v627_v34  ;;  %371 = vmatprep.mubr.bf16.mxu0 %v630_v36 }
  0x25   :  { %420 = vmatprep.mubr.bf16.mxu1 %v632_v37 }
  0x2b   :  { %372 = vmatmul.mubr.bf16.gmra.mxu0 %v634_v38 }
  0x2c   :  { %421 = vmatmul.mubr.bf16.gmra.mxu1 %v635_v39 }
  0xe3   :  { %v551_v41 = vpop.f32.mrf.mxu0 }
  0xe4   :  { %v579_v42 = vpop.f32.mrf.mxu1 }
  0xe5   :  { %v552_v43 = vpop.f32.mrf.mxu0 }
  0xe6   :  { %v553_v44 = vadd.f32 %v552_v43, %v551_v41  ;;  %v580_v45 = vpop.f32.mrf.mxu1 }
  0xe7   :  { %v581_v46 = vadd.f32 %v580_v45, %v579_v42  ;;  %v554_v47 = vpop.f32.mrf.mxu0 }
  0xe8   :  { %v582_v48 = vpop.f32.mrf.mxu1 }
  0xe9   :  { %v415_v49 = vadd.f32 %v581_v46, %v553_v44  ;;  %v555_v50 = vpop.f32.mrf.mxu0 }
  0xea   :  { %v556_v51 = vadd.f32 %v555_v50, %v554_v47  ;;  %v583_v52 = vpop.f32.mrf.mxu1 }
  0xeb   :  { %451 = vst [vmem:[%s816_s2] sm:$0xff] %v415_v49  ;;  %v584_v53 = vadd.f32 %v583_v52, %v582_v48  ;;  %v557_v54 = vpop.f32.mrf.mxu0  ;;  %v468_v4 = vmul.f32 %v415_v49, %v415_v49 }
  0xec   :  { %v585_v55 = vpop.f32.mrf.mxu1 }
  0xed   :  { %v418_v56 = vadd.f32 %v584_v53, %v556_v51  ;;  %v558_v57 = vpop.f32.mrf.mxu0 }
  0xee   :  { %v559_v58 = vadd.f32 %v558_v57, %v557_v54  ;;  %v586_v59 = vpop.f32.mrf.mxu1 }
  0xef   :  { %452 = vst [vmem:[%s816_s2 + $0x8] sm:$0xff] %v418_v56  ;;  %v587_v60 = vadd.f32 %v586_v59, %v585_v55  ;;  %v560_v61 = vpop.f32.mrf.mxu0  ;;  %v469_v63 = vmul.f32 %v418_v56, %v418_v56  ;;  %v456_v5 = vadd.f32 %v418_v56, %v415_v49 }
  0xf0   :  { %v588_v62 = vpop.f32.mrf.mxu1 }
  0xf1   :  { %v423_v0 = vadd.f32 %v587_v60, %v559_v58  ;;  %v561_v1 = vpop.f32.mrf.mxu0  ;;  %v472_v8 = vadd.f32 %v469_v63, %v468_v4 }
  0xf2   :  { %v562_v2 = vadd.f32 %v561_v1, %v560_v61  ;;  %v589_v3 = vpop.f32.mrf.mxu1 }
  0xf3   :  { %453 = vst [vmem:[%s816_s2 + $0x10] sm:$0xff] %v423_v0  ;;  %v470_v6 = vmul.f32 %v423_v0, %v423_v0  ;;  %v590_v7 = vadd.f32 %v589_v3, %v588_v62  ;;  %v457_v9 = vadd.f32 %v456_v5, %v423_v0 }
  0xf5   :  { %v426_v10 = vadd.f32 %v590_v7, %v562_v2  ;;  %v473_v11 = vadd.f32 %v472_v8, %v470_v6 }
  0xf7   :  { %454 = vst [vmem:[%s816_s2 + $0x18] sm:$0xff] %v426_v10  ;;  %v458_v12 = vadd.f32 %v457_v9, %v426_v10  ;;  %v471_v13 = vmul.f32 %v426_v10, %v426_v10 }
  0xf9   :  { %v459_v14 = vrot.slane %v458_v12, 4  ;;  %v474_v15 = vadd.f32 %v473_v11, %v471_v13 }
  0xfb   :  { %v460_v16 = vadd.f32 %v459_v14, %v458_v12  ;;  %v475_v17 = vrot.slane %v474_v15, 4 }
  0xfd   :  { %v461_v18 = vrot.slane %v460_v16, 2  ;;  %v476_v19 = vadd.f32 %v475_v17, %v474_v15 }
  0xff   :  { %v462_v20 = vadd.f32 %v461_v18, %v460_v16  ;;  %v477_v21 = vrot.slane %v476_v19, 2 }
 0x101   :  { %v463_v22 = vrot.slane %v462_v20, 1  ;;  %v478_v23 = vadd.f32 %v477_v21, %v476_v19 }
 0x103   :  { %v464_v25 = vadd.f32 %v463_v22, %v462_v20  ;;  %v479_v26 = vrot.slane %v478_v23, 1 }
 0x105   :  { %v465_v28 = vadd.f32 %v464_v25, %v455_v24  ;;  %v480_v29 = vadd.f32 %v479_v26, %v478_v23 }
 0x107   :  { %466 = vst [vmem:[%s814_s3] sm:$0x1] %v465_v28  ;;  %v481_v30 = vadd.f32 %v480_v29, %v467_v27 }
 0x109   :  { %482 = vst [vmem:[%s815_s4] sm:$0x1] %v481_v30 }

// kernel: _lambda_.18
= control target key start
LH: loop header
LB: loop body
LE: loop exit
PB: predicated region body
PF: predicated region fallthrough
CT: control target
= control target key end

     0   :  { %v216_v0 = vmov 0.0   ;;  %vm217_vm0 = vmmov 0   ;;  %s274_s1 = inlined_call_operand.vmem [shape: bf16[128,128], index: 1, kind: input, shape index: {}]   ;;  %s275_s0 = inlined_call_operand.vmem [shape: bf16[16,128], index: 0, kind: input, shape index: {}]   ;;  %s276_s2 = inlined_call_operand.vmem [shape: f32[1,128], index: 2, kind: input, shape index: {}]   ;;  %s277_s3 = inlined_call_operand.vmem [shape: f32[16,128], index: 3, kind: output, shape index: {}]  }
   0x1   :  { %185 = vmatprep.subr.bf16.mxu0 %v216_v0  ;;  %v207_v1 = vld [vmem:[%s274_s1 + $0x38] sm:$0xff]   ;;  %201 = vmatprep.mubr.msk.bf16.mxu0 %vm217_vm0, %v216_v0  ;;  %v208_v2 = vld [vmem:[%s274_s1 + $0x30] sm:$0xff]   ;;  %v209_v3 = vld [vmem:[%s274_s1 + $0x28] sm:$0xff]  }
   0x2   :  { %186 = vmatpush3.bf16.msra.mxu0 %v207_v1  ;;  %v210_v4 = vld [vmem:[%s274_s1 + $0x20] sm:$0xff]   ;;  %v211_v5 = vld [vmem:[%s274_s1 + $0x18] sm:$0xff]   ;;  %v212_v6 = vld [vmem:[%s274_s1 + $0x10] sm:$0xff]  }
   0x3   :  { %187 = vmatprep.subr.bf16.mxu0 %v216_v0  ;;  %v213_v7 = vld [vmem:[%s274_s1 + $0x8] sm:$0xff]   ;;  %v214_v8 = vld [vmem:[%s274_s1] sm:$0xff]  }
   0x4   :  { %v215_v9 = vld [vmem:[%s275_s0] sm:$0xff]  }
   0x5   :  { %v175_v10 = vld [vmem:[%s276_s2] ss:$0 sm:$0xff] }
   0x6   :  { %188 = vmatpush3.bf16.msra.mxu0 %v208_v2 }
   0x7   :  { %189 = vmatprep.subr.bf16.mxu0 %v216_v0 }
   0xa   :  { %190 = vmatpush3.bf16.msra.mxu0 %v209_v3 }
   0xb   :  { %191 = vmatprep.subr.bf16.mxu0 %v216_v0 }
   0xe   :  { %192 = vmatpush3.bf16.msra.mxu0 %v210_v4 }
   0xf   :  { %193 = vmatprep.subr.bf16.mxu0 %v216_v0 }
  0x12   :  { %194 = vmatpush3.bf16.msra.mxu0 %v211_v5 }
  0x13   :  { %195 = vmatprep.subr.bf16.mxu0 %v216_v0 }
  0x16   :  { %196 = vmatpush3.bf16.msra.mxu0 %v212_v6 }
  0x17   :  { %197 = vmatprep.subr.bf16.mxu0 %v216_v0 }
  0x1a   :  { %198 = vmatpush3.bf16.msra.mxu0 %v213_v7 }
  0x1b   :  { %199 = vmatprep.subr.bf16.mxu0 %v216_v0 }
  0x1e   :  { %200 = vmatpush3.bf16.msra.mxu0 %v214_v8 }
  0x21   :  { %202 = vmatmul.mubr.bf16.vlgmr.msra.gmra.mxu0 %v215_v9 }
  0xe1   :  { %v129_v11 = vpop.f32.mrf.mxu0 }
  0xe2   :  { %v152_v12 = vadd.f32 %v175_v10, %v129_v11 }
  0xe3   :  { %v203_v13 = vpop.f32.mrf.mxu0 }
  0xe4   :  { %vm154_vm1 = vcmp.gt.f32.partialorder %v152_v12, 0.0  ;;  %v156_v14 = vmul.f32 0.2, %v152_v12 }
  0xe5   :  { %v132_v15 = vpop.f32.mrf.mxu0 }
  0xe6   :  { %v158_v16 = vsel %vm154_vm1, %v152_v12, %v156_v14  ;;  %v153_v17 = vadd.f32 %v175_v10, %v132_v15 }
  0xe7   :  { %160 = vst [vmem:[%s277_s3] sm:$0xff] %v158_v16  ;;  %v204_v18 = vpop.f32.mrf.mxu0 }
  0xe8   :  { %vm155_vm2 = vcmp.gt.f32.partialorder %v153_v17, 0.0  ;;  %v157_v19 = vmul.f32 0.2, %v153_v17 }
  0xea   :  { %v159_v20 = vsel %vm155_vm2, %v153_v17, %v157_v19 }
  0xeb   :  { %161 = vst [vmem:[%s277_s3 + $0x8] sm:$0xff] %v159_v20 }

// kernel: _lambda_.17
= control target key start
LH: loop header
LB: loop body
LE: loop exit
PB: predicated region body
PF: predicated region fallthrough
CT: control target
= control target key end

     0   :  { %s1273_s12 = smov 0   ;;  %s1275_s13 = smov 0   ;;  %s1437_s0 = inlined_call_operand.vmem [shape: bf16[64,1024], index: 0, kind: input, shape index: {}]   ;;  %s1438_s1 = inlined_call_operand.vmem [shape: bf16[1024,128], index: 1, kind: input, shape index: {}]   ;;  %s1439_s2 = inlined_call_operand.vmem [shape: f32[1,128], index: 2, kind: input, shape index: {}]   ;;  %s1440_s3 = inlined_call_operand.vmem [shape: f32[64,128], index: 3, kind: output, shape index: {}]  }
   0x1   :  { %s1277_s14 = smov 0   ;;  %s1279_s15 = smov 0  }
   0x2   :  { %s1281_s16 = smov 0  }
   0x3 LB: > { %s25_s17 = sadd.s32 1, %s1246_s15  ;;  %p48_p1 = scmp.ne.s32.totalorder %s1238_s13, %s1234_s12  ;;  %s1250_s16 = sphi %s1281_s16, %s13_s16   ;;  %s1246_s15 = sphi %s1279_s15, %s1444_s15   ;;  %s1242_s14 = sphi %s1277_s14, %s1443_s14   ;;  %s1238_s13 = sphi %s1275_s13, %s1442_s13   ;;  %s1234_s12 = sphi %s1273_s12, %s1441_s12  }
   0x4   : > { %p26_p0 = scmp.ge.s32.totalorder %s25_s17, 2  ;;  %p49_p2 = scmp.eq.s32.totalorder %s1250_s16, 0 }
   0x5   : > { %s41_s19 = sadd.s32 1, %s1238_s13  ;;  %p971_p5 = scmp.ge.s32.totalorder %s1250_s16, 2 }
   0x6   : > { %s1446_s17 = smov (%p26_p0, %s25_s17), 0  ;;  %p50_p3 = por %p49_p2, %p48_p1 }
   0x7   : > { %s37_s18 = ssub.s32 %s1246_s15, %s1446_s17  ;;  %162 = sbr.rel (%p971_p5) target bundleno = 24 (0x18), region = 20 }
   0x8   : > { %p39_p4 = scmp.eq.s32.totalorder %s37_s18, 0 }
   0xa   : > { %s1308_s20 = scalar_select %p39_p4, %s1238_s13, %s41_s19  }
   0xc   : > { %165 = sbr.rel (!%p50_p3) target bundleno = 24 (0x18), region = 24  ;;  %s167_s21 = sand.u32 (%p50_p3), 1, %s1238_s13  }
   0xd   : > { %s1034_s22 = sshll.u32 (%p50_p3), %s1246_s15, 4  ;;  %s972_s23 = sshll.u32 (%p50_p3), %s167_s21, 7 }
   0xe   : > { %s1316_s26 = scalar_lea.vmem (%p50_p3), %s1437_s0, %s1034_s22  ;;  %s169_s27 = scalar_lea.vmem (%p50_p3), [#allocation3], %s972_s23 }
   0xf   : > { %v188_v0 = vld [vmem:[%s1316_s26] sm:$0xff] (%p50_p3)  ;;  %v190_v1 = vld [vmem:[%s1316_s26 + $0x8] sm:$0xff] (%p50_p3) }
  0x10   : > { %v192_v2 = vld [vmem:[%s1316_s26 + $0x20] sm:$0xff] (%p50_p3)  ;;  %189 = vst [vmem:[%s169_s27] sm:$0xff] (%p50_p3), %v188_v0  ;;  %191 = vst [vmem:[%s169_s27 + $0x8] sm:$0xff] (%p50_p3), %v190_v1  ;;  %v194_v3 = vld [vmem:[%s1316_s26 + $0x28] sm:$0xff] (%p50_p3) }
  0x11   : > { %193 = vst [vmem:[%s169_s27 + $0x10] sm:$0xff] %v192_v2  ;;  %v196_v4 = vld [vmem:[%s1316_s26 + $0x40] sm:$0xff]  ;;  %v198_v5 = vld [vmem:[%s1316_s26 + $0x48] sm:$0xff]  ;;  %195 = vst [vmem:[%s169_s27 + $0x18] sm:$0xff] %v194_v3 }
  0x12   : > { %197 = vst [vmem:[%s169_s27 + $0x20] sm:$0xff] %v196_v4  ;;  %199 = vst [vmem:[%s169_s27 + $0x28] sm:$0xff] %v198_v5  ;;  %v200_v6 = vld [vmem:[%s1316_s26 + $0x60] sm:$0xff]  ;;  %v202_v7 = vld [vmem:[%s1316_s26 + $0x68] sm:$0xff] }
  0x13   : > { %v204_v8 = vld [vmem:[%s1316_s26 + $0x80] sm:$0xff]  ;;  %201 = vst [vmem:[%s169_s27 + $0x30] sm:$0xff] %v200_v6  ;;  %203 = vst [vmem:[%s169_s27 + $0x38] sm:$0xff] %v202_v7  ;;  %v206_v9 = vld [vmem:[%s1316_s26 + $0x88] sm:$0xff] }
  0x14   : > { %205 = vst [vmem:[%s169_s27 + $0x40] sm:$0xff] %v204_v8  ;;  %v208_v10 = vld [vmem:[%s1316_s26 + $0xa0] sm:$0xff]  ;;  %v210_v11 = vld [vmem:[%s1316_s26 + $0xa8] sm:$0xff]  ;;  %207 = vst [vmem:[%s169_s27 + $0x48] sm:$0xff] %v206_v9 }
  0x15   : > { %209 = vst [vmem:[%s169_s27 + $0x50] sm:$0xff] %v208_v10  ;;  %211 = vst [vmem:[%s169_s27 + $0x58] sm:$0xff] %v210_v11  ;;  %v212_v12 = vld [vmem:[%s1316_s26 + $0xc0] sm:$0xff]  ;;  %v214_v13 = vld [vmem:[%s1316_s26 + $0xc8] sm:$0xff] }
  0x16   : > { %v216_v14 = vld [vmem:[%s1316_s26 + $0xe0] sm:$0xff]  ;;  %213 = vst [vmem:[%s169_s27 + $0x60] sm:$0xff] %v212_v12  ;;  %215 = vst [vmem:[%s169_s27 + $0x68] sm:$0xff] %v214_v13  ;;  %v218_v15 = vld [vmem:[%s1316_s26 + $0xe8] sm:$0xff] }
  0x17   : > { %217 = vst [vmem:[%s169_s27 + $0x70] sm:$0xff] %v216_v14  ;;  %219 = vst [vmem:[%s169_s27 + $0x78] sm:$0xff] %v218_v15 }
  0x18 PF: > { %p975_p6 = scmp.ge.s32.totalorder %s1250_s16, 1  ;;  %p236_p7 = scmp.lt.s32.totalorder %s1250_s16, 3 }
  0x1a   : > { %p237_p8 = pnand %p975_p6, %p236_p7 }
  0x1b   : > { %s243_s28 = sand.u32 (!%p237_p8), 1, %s1234_s12   ;;  %s977_s29 = sshll.u32 (!%p237_p8), %s1242_s14, 6 }
  0x1c   : > { %240 = sbr.rel (%p237_p8) target bundleno = 318 (0x13e), region = 51  ;;  %s976_s30 = sshll.u32 (!%p237_p8), %s243_s28, 7 }
  0x1d   : > { %p283_p9 = scmp.lt.s32.totalorder (!%p237_p8), %s977_s29, 127  ;;  %s1343_s8 = scalar_lea.vmem (!%p237_p8), [#allocation3], %s976_s30 }
  0x1e   : > { %p979_p10 = scmp.ne.s32.totalorder (!%p237_p8), %s1242_s14, 0 }
  0x21   : > { %s1448_s29 = smov (!%p283_p9, %s977_s29), 127  ;;  %307 = sbr.rel (%p979_p10) target bundleno = 43 (0x2b), region = 59 }
  0x22   : > { %s978_s4 = sshll.u32 %s1448_s29, 2 }
  0x23   : > { %s1341_s7 = scalar_lea.vmem %s1438_s1, %s978_s4 }
  0x26   : > { %v1252_v16 = vmov 0.0  }
  0x27   : > { %308 = vst [vmem:[#allocation2 + $0x30] sm:$0xff] %v1252_v16  ;;  %309 = vst [vmem:[#allocation2] sm:$0xff] %v1252_v16 }
  0x28   : > { %310 = vst [vmem:[#allocation2 + $0x18] sm:$0xff] %v1252_v16  ;;  %311 = vst [vmem:[#allocation2 + $0x10] sm:$0xff] %v1252_v16 }
  0x29   : > { %312 = vst [vmem:[#allocation2 + $0x8] sm:$0xff] %v1252_v16  ;;  %313 = vst [vmem:[#allocation2 + $0x20] sm:$0xff] %v1252_v16 }
  0x2a   : > { %314 = vst [vmem:[#allocation2 + $0x28] sm:$0xff] %v1252_v16  ;;  %315 = vst [vmem:[#allocation2 + $0x38] sm:$0xff] %v1252_v16 }
  0x2b PF: > { %v1156_v17 = vld [vmem:[%s1341_s7 + $0x78] sm:$0xff]   ;;  %v1160_v21 = vld [vmem:[%s1341_s7 + $0x70] sm:$0xff]   ;;  %v1164_v25 = vld [vmem:[%s1341_s7 + $0x68] sm:$0xff]   ;;  %p1028_p11 = scmp.ne.s32.totalorder %s1242_s14, 1 }
  0x2c   : > { %v1157_v18 = vld [vmem:[%s1341_s7 + $0xf8] sm:$0xff]   ;;  %1035 = vmatprep.subr.bf16.mxu0 %v1156_v17  ;;  %v1161_v22 = vld [vmem:[%s1341_s7 + $0xf0] sm:$0xff]   ;;  %v1165_v26 = vld [vmem:[%s1341_s7 + $0xe8] sm:$0xff]  }
  0x2d   : > { %v1158_v19 = vld [vmem:[%s1341_s7 + $0x38] sm:$0xff]   ;;  %1075 = vmatprep.subr.bf16.mxu1 %v1157_v18  ;;  %v1162_v23 = vld [vmem:[%s1341_s7 + $0x30] sm:$0xff]   ;;  %v1166_v27 = vld [vmem:[%s1341_s7 + $0x28] sm:$0xff]  }
  0x2e   : > { %v1159_v20 = vld [vmem:[%s1341_s7 + $0xb8] sm:$0xff]   ;;  %1036 = vmatpush3.bf16.msra.mxu0 %v1158_v19  ;;  %v1163_v24 = vld [vmem:[%s1341_s7 + $0xb0] sm:$0xff]   ;;  %v1167_v28 = vld [vmem:[%s1341_s7 + $0xa8] sm:$0xff]  }
  0x2f   : > { %1076 = vmatpush3.bf16.msra.mxu1 %v1159_v20  ;;  %1037 = vmatprep.subr.bf16.mxu0 %v1160_v21  ;;  %v1168_v29 = vld [vmem:[%s1341_s7 + $0x60] sm:$0xff]   ;;  %v1172_v33 = vld [vmem:[%s1341_s7 + $0x58] sm:$0xff]   ;;  %v1176_v37 = vld [vmem:[%s1341_s7 + $0x50] sm:$0xff]  }
  0x30   : > { %1077 = vmatprep.subr.bf16.mxu1 %v1161_v22  ;;  %v1169_v30 = vld [vmem:[%s1341_s7 + $0xe0] sm:$0xff]   ;;  %v1173_v34 = vld [vmem:[%s1341_s7 + $0xd8] sm:$0xff]   ;;  %v1177_v38 = vld [vmem:[%s1341_s7 + $0xd0] sm:$0xff]  }
  0x31   : > { %v1170_v31 = vld [vmem:[%s1341_s7 + $0x20] sm:$0xff]   ;;  %v1174_v35 = vld [vmem:[%s1341_s7 + $0x18] sm:$0xff]   ;;  %v1178_v39 = vld [vmem:[%s1341_s7 + $0x10] sm:$0xff]  }
  0x32   : > { %1038 = vmatpush3.bf16.msra.mxu0 %v1162_v23  ;;  %v1171_v32 = vld [vmem:[%s1341_s7 + $0xa0] sm:$0xff]   ;;  %v1175_v36 = vld [vmem:[%s1341_s7 + $0x98] sm:$0xff]   ;;  %v1179_v40 = vld [vmem:[%s1341_s7 + $0x90] sm:$0xff]  }
  0x33   : > { %1078 = vmatpush3.bf16.msra.mxu1 %v1163_v24  ;;  %1039 = vmatprep.subr.bf16.mxu0 %v1164_v25  ;;  %v1180_v41 = vld [vmem:[%s1341_s7 + $0x48] sm:$0xff]   ;;  %v1184_v45 = vld [vmem:[%s1341_s7 + $0x40] sm:$0xff]   ;;  %v316_v8 = vld [vmem:[#allocation2 + $0x30] sm:$0xff] }
  0x34   : > { %1079 = vmatprep.subr.bf16.mxu1 %v1165_v26  ;;  %v1181_v42 = vld [vmem:[%s1341_s7 + $0xc8] sm:$0xff]   ;;  %v1185_v46 = vld [vmem:[%s1341_s7 + $0xc0] sm:$0xff]   ;;  %v318_v26 = vld [vmem:[#allocation2 + $0x18] sm:$0xff] }
  0x35   : > { %v1182_v43 = vld [vmem:[%s1341_s7 + $0x8] sm:$0xff]   ;;  %v1186_v47 = vld [vmem:[%s1341_s7] sm:$0xff]  }
  0x36   : > { %1040 = vmatpush3.bf16.msra.mxu0 %v1166_v27  ;;  %v1183_v44 = vld [vmem:[%s1341_s7 + $0x88] sm:$0xff]   ;;  %v1187_v48 = vld [vmem:[%s1341_s7 + $0x80] sm:$0xff]  }
  0x37   : > { %1080 = vmatpush3.bf16.msra.mxu1 %v1167_v28  ;;  %1041 = vmatprep.subr.bf16.mxu0 %v1168_v29  ;;  %v1188_v49 = vld [vmem:[%s1343_s8] ss:$16 sps:$4 sm:$0xff]   ;;  %v1190_v50 = vld [vmem:[%s1343_s8 + $0x4] ss:$16 sps:$4 sm:$0xff]   ;;  %v1191_v51 = vld [vmem:[%s1343_s8 + $0x8] ss:$16 sps:$4 sm:$0xff]  }
  0x38   : > { %1081 = vmatprep.subr.bf16.mxu1 %v1169_v30  ;;  %v1193_v52 = vld [vmem:[%s1343_s8 + $0xc] ss:$16 sps:$4 sm:$0xff]   ;;  %708 = vmatprep.mubr.bf16.mxu0 %v1190_v50  ;;  %v1194_v53 = vld [vmem:[%s1343_s8 + $0x24] ss:$16 sps:$4 sm:$0xff]   ;;  %v1198_v55 = vld [vmem:[%s1343_s8 + $0x20] ss:$16 sps:$4 sm:$0xff]  }
  0x39   : > { %773 = vmatprep.mubr.bf16.mxu1 %v1193_v52  ;;  %v1196_v54 = vld [vmem:[%s1343_s8 + $0x2c] ss:$16 sps:$4 sm:$0xff]   ;;  %v1199_v56 = vld [vmem:[%s1343_s8 + $0x28] ss:$16 sps:$4 sm:$0xff]   ;;  %v1200_v57 = vld [vmem:[%s1343_s8 + $0x44] ss:$16 sps:$4 sm:$0xff]  }
  0x3a   : > { %1042 = vmatpush3.bf16.msra.mxu0 %v1170_v31  ;;  %v1202_v58 = vld [vmem:[%s1343_s8 + $0x4c] ss:$16 sps:$4 sm:$0xff]   ;;  %v1204_v59 = vld [vmem:[%s1343_s8 + $0x40] ss:$16 sps:$4 sm:$0xff]   ;;  %v1205_v60 = vld [vmem:[%s1343_s8 + $0x48] ss:$16 sps:$4 sm:$0xff]  }
  0x3b   : > { %1082 = vmatpush3.bf16.msra.mxu1 %v1171_v32  ;;  %1043 = vmatprep.subr.bf16.mxu0 %v1172_v33  ;;  %v1206_v61 = vld [vmem:[%s1343_s8 + $0x64] ss:$16 sps:$4 sm:$0xff]   ;;  %v1208_v62 = vld [vmem:[%s1343_s8 + $0x6c] ss:$16 sps:$4 sm:$0xff]   ;;  %v1210_v63 = vld [vmem:[%s1343_s8 + $0x60] ss:$16 sps:$4 sm:$0xff]  }
  0x3c   : > { %1083 = vmatprep.subr.bf16.mxu1 %v1173_v34  ;;  %v1211_v0 = vld [vmem:[%s1343_s8 + $0x68] ss:$16 sps:$4 sm:$0xff]   ;;  %v317_v17 = vld [vmem:[#allocation2] sm:$0xff] }
  0x3e   : > { %1044 = vmatpush3.bf16.msra.mxu0 %v1174_v35  ;;  %v319_v35 = vld [vmem:[#allocation2 + $0x10] sm:$0xff] }
  0x3f   : > { %1084 = vmatpush3.bf16.msra.mxu1 %v1175_v36  ;;  %1045 = vmatprep.subr.bf16.mxu0 %v1176_v37 }
  0x40   : > { %1085 = vmatprep.subr.bf16.mxu1 %v1177_v38 }
  0x42   : > { %1046 = vmatpush3.bf16.msra.mxu0 %v1178_v39 }
  0x43   : > { %1086 = vmatpush3.bf16.msra.mxu1 %v1179_v40  ;;  %1047 = vmatprep.subr.bf16.mxu0 %v1180_v41 }
  0x44   : > { %1087 = vmatprep.subr.bf16.mxu1 %v1181_v42 }
  0x46   : > { %1048 = vmatpush3.bf16.msra.mxu0 %v1182_v43 }
  0x47   : > { %1088 = vmatpush3.bf16.msra.mxu1 %v1183_v44  ;;  %1049 = vmatprep.subr.bf16.mxu0 %v1184_v45  ;;  %v320_v44 = vld [vmem:[#allocation2 + $0x8] sm:$0xff] }
  0x48   : > { %1089 = vmatprep.subr.bf16.mxu1 %v1185_v46 }
  0x4a   : > { %1050 = vmatpush3.bf16.msra.mxu0 %v1186_v47 }
  0x4b   : > { %1090 = vmatpush3.bf16.msra.mxu1 %v1187_v48 }
  0x4d   : > { %709 = vmatmul.mubr.bf16.vlgmr.msra.gmra.mxu0 %v1188_v49 }
  0x4e   : > { %774 = vmatmul.mubr.bf16.vlgmr.msra.gmra.mxu1 %v1191_v51  ;;  %716 = vmatprep.mubr.bf16.mxu0 %v1194_v53  ;;  %v321_v53 = vld [vmem:[#allocation2 + $0x20] sm:$0xff] }
  0x4f   : > { %781 = vmatprep.mubr.bf16.mxu1 %v1196_v54 }
  0x55   : > { %717 = vmatmul.mubr.bf16.gmra.mxu0 %v1198_v55 }
  0x56   : > { %782 = vmatmul.mubr.bf16.gmra.mxu1 %v1199_v56  ;;  %724 = vmatprep.mubr.bf16.mxu0 %v1200_v57 }
  0x57   : > { %789 = vmatprep.mubr.bf16.mxu1 %v1202_v58 }
  0x5d   : > { %725 = vmatmul.mubr.bf16.gmra.mxu0 %v1204_v59 }
  0x5e   : > { %790 = vmatmul.mubr.bf16.gmra.mxu1 %v1205_v60  ;;  %732 = vmatprep.mubr.bf16.mxu0 %v1206_v61 }
  0x5f   : > { %797 = vmatprep.mubr.bf16.mxu1 %v1208_v62  ;;  %v322_v62 = vld [vmem:[#allocation2 + $0x28] sm:$0xff] }
  0x65   : > { %733 = vmatmul.mubr.bf16.gmra.mxu0 %v1210_v63 }
  0x66   : > { %798 = vmatmul.mubr.bf16.gmra.mxu1 %v1211_v0 }
 0x10d   : > { %v1051_v1 = vpop.f32.mrf.mxu0 }
 0x10e   : > { %v1091_v2 = vpop.f32.mrf.mxu1 }
 0x10f   : > { %v1052_v3 = vpop.f32.mrf.mxu0 }
 0x110   : > { %v1053_v4 = vadd.f32 %v1052_v3, %v1051_v1  ;;  %v1092_v5 = vpop.f32.mrf.mxu1 }
 0x111   : > { %v1093_v6 = vadd.f32 %v1092_v5, %v1091_v2  ;;  %v1054_v7 = vpop.f32.mrf.mxu0 }
 0x112   : > { %v1094_v9 = vpop.f32.mrf.mxu1 }
 0x113   : > { %v776_v10 = vadd.f32 %v1093_v6, %v1053_v4  ;;  %v1055_v11 = vpop.f32.mrf.mxu0  ;;  %v323_v6 = vld [vmem:[#allocation2 + $0x38] sm:$0xff] }
 0x114   : > { %v1056_v12 = vadd.f32 %v1055_v11, %v1054_v7  ;;  %v1095_v13 = vpop.f32.mrf.mxu1 }
 0x115   : > { %v806_v14 = vadd.f32 %v776_v10, %v316_v8  ;;  %v1096_v15 = vadd.f32 %v1095_v13, %v1094_v9  ;;  %v1057_v16 = vpop.f32.mrf.mxu0 }
 0x116   : > { %v1097_v18 = vpop.f32.mrf.mxu1 }
 0x117   : > { %814 = vst [vmem:[#allocation2 + $0x30] sm:$0xff] %v806_v14  ;;  %v779_v19 = vadd.f32 %v1096_v15, %v1056_v12  ;;  %v1058_v20 = vpop.f32.mrf.mxu0 }
 0x118   : > { %v1059_v21 = vadd.f32 %v1058_v20, %v1057_v16  ;;  %v1098_v22 = vpop.f32.mrf.mxu1 }
 0x119   : > { %v807_v23 = vadd.f32 %v779_v19, %v317_v17  ;;  %v1099_v24 = vadd.f32 %v1098_v22, %v1097_v18  ;;  %v1060_v25 = vpop.f32.mrf.mxu0 }
 0x11a   : > { %v1100_v27 = vpop.f32.mrf.mxu1 }
 0x11b   : > { %815 = vst [vmem:[#allocation2] sm:$0xff] %v807_v23  ;;  %v784_v28 = vadd.f32 %v1099_v24, %v1059_v21  ;;  %v1061_v29 = vpop.f32.mrf.mxu0 }
 0x11c   : > { %v1062_v30 = vadd.f32 %v1061_v29, %v1060_v25  ;;  %v1101_v31 = vpop.f32.mrf.mxu1 }
 0x11d   : > { %v808_v32 = vadd.f32 %v784_v28, %v318_v26  ;;  %v1102_v33 = vadd.f32 %v1101_v31, %v1100_v27  ;;  %v1063_v34 = vpop.f32.mrf.mxu0 }
 0x11e   : > { %v1103_v36 = vpop.f32.mrf.mxu1 }
 0x11f   : > { %816 = vst [vmem:[#allocation2 + $0x18] sm:$0xff] %v808_v32  ;;  %v787_v37 = vadd.f32 %v1102_v33, %v1062_v30  ;;  %v1064_v38 = vpop.f32.mrf.mxu0 }
 0x120   : > { %v1065_v39 = vadd.f32 %v1064_v38, %v1063_v34  ;;  %v1104_v40 = vpop.f32.mrf.mxu1 }
 0x121   : > { %v809_v41 = vadd.f32 %v787_v37, %v319_v35  ;;  %v1105_v42 = vadd.f32 %v1104_v40, %v1103_v36  ;;  %v1066_v43 = vpop.f32.mrf.mxu0 }
 0x122   : > { %v1106_v45 = vpop.f32.mrf.mxu1 }
 0x123   : > { %817 = vst [vmem:[#allocation2 + $0x10] sm:$0xff] %v809_v41  ;;  %v792_v46 = vadd.f32 %v1105_v42, %v1065_v39  ;;  %v1067_v47 = vpop.f32.mrf.mxu0 }
 0x124   : > { %v1068_v48 = vadd.f32 %v1067_v47, %v1066_v43  ;;  %v1107_v49 = vpop.f32.mrf.mxu1 }
 0x125   : > { %v810_v50 = vadd.f32 %v792_v46, %v320_v44  ;;  %v1108_v51 = vadd.f32 %v1107_v49, %v1106_v45  ;;  %v1069_v52 = vpop.f32.mrf.mxu0 }
 0x126   : > { %v1109_v54 = vpop.f32.mrf.mxu1 }
 0x127   : > { %818 = vst [vmem:[#allocation2 + $0x8] sm:$0xff] %v810_v50  ;;  %v795_v55 = vadd.f32 %v1108_v51, %v1068_v48  ;;  %v1070_v56 = vpop.f32.mrf.mxu0 }
 0x128   : > { %v1071_v57 = vadd.f32 %v1070_v56, %v1069_v52  ;;  %v1110_v58 = vpop.f32.mrf.mxu1 }
 0x129   : > { %v811_v59 = vadd.f32 %v795_v55, %v321_v53  ;;  %v1111_v60 = vadd.f32 %v1110_v58, %v1109_v54  ;;  %v1072_v61 = vpop.f32.mrf.mxu0 }
 0x12a   : > { %v1112_v63 = vpop.f32.mrf.mxu1 }
 0x12b   : > { %819 = vst [vmem:[#allocation2 + $0x20] sm:$0xff] %v811_v59  ;;  %v800_v0 = vadd.f32 %v1111_v60, %v1071_v57  ;;  %v1073_v1 = vpop.f32.mrf.mxu0 }
 0x12c   : > { %v1074_v2 = vadd.f32 %v1073_v1, %v1072_v61  ;;  %v1113_v3 = vpop.f32.mrf.mxu1 }
 0x12d   : > { %v812_v4 = vadd.f32 %v800_v0, %v322_v62  ;;  %v1114_v5 = vadd.f32 %v1113_v3, %v1112_v63 }
 0x12f   : > { %820 = vst [vmem:[#allocation2 + $0x28] sm:$0xff] %v812_v4  ;;  %v803_v7 = vadd.f32 %v1114_v5, %v1074_v2  ;;  %825 = sbr.rel (%p1028_p11) target bundleno = 318 (0x13e), region = 63 }
 0x131   : > { %v813_v8 = vadd.f32 %v803_v7, %v323_v6 }
 0x133   : > { %821 = vst [vmem:[#allocation2 + $0x38] sm:$0xff] %v813_v8 }
 0x134   : > { %v826_v9 = vld [vmem:[#allocation2 + $0x30] sm:$0xff]  ;;  %v1029_v10 = vld [vmem:[%s1439_s2] ss:$0 sm:$0xff]  ;;  %v828_v14 = vld [vmem:[#allocation2 + $0x18] sm:$0xff] }
 0x135   : > { %v827_v11 = vld [vmem:[#allocation2] sm:$0xff]  ;;  %v841_v12 = vadd.f32 %v1029_v10, %v826_v9  ;;  %v829_v15 = vld [vmem:[#allocation2 + $0x10] sm:$0xff]  ;;  %v830_v16 = vld [vmem:[#allocation2 + $0x8] sm:$0xff]  ;;  %v843_v17 = vadd.f32 %v1029_v10, %v828_v14 }
 0x136   : > { %v842_v13 = vadd.f32 %v1029_v10, %v827_v11  ;;  %v844_v18 = vadd.f32 %v1029_v10, %v829_v15  ;;  %v845_v19 = vadd.f32 %v1029_v10, %v830_v16  ;;  %v831_v20 = vld [vmem:[#allocation2 + $0x20] sm:$0xff]  ;;  %v832_v21 = vld [vmem:[#allocation2 + $0x28] sm:$0xff] }
 0x137   : > { %849 = vst [vmem:[%s1440_s3] sm:$0xff] %v841_v12  ;;  %v846_v23 = vadd.f32 %v1029_v10, %v831_v20  ;;  %v847_v24 = vadd.f32 %v1029_v10, %v832_v21  ;;  %851 = vst [vmem:[%s1440_s3 + $0x10] sm:$0xff] %v843_v17 }
 0x138   : > { %850 = vst [vmem:[%s1440_s3 + $0x8] sm:$0xff] %v842_v13  ;;  %852 = vst [vmem:[%s1440_s3 + $0x18] sm:$0xff] %v844_v18 }
 0x139   : > { %853 = vst [vmem:[%s1440_s3 + $0x20] sm:$0xff] %v845_v19  ;;  %854 = vst [vmem:[%s1440_s3 + $0x28] sm:$0xff] %v846_v23 }
 0x13a   : > { %v833_v22 = vld [vmem:[#allocation2 + $0x38] sm:$0xff]  ;;  %855 = vst [vmem:[%s1440_s3 + $0x30] sm:$0xff] %v847_v24 }
 0x13b   : > { %v848_v25 = vadd.f32 %v1029_v10, %v833_v22 }
 0x13d   : > { %856 = vst [vmem:[%s1440_s3 + $0x38] sm:$0xff] %v848_v25 }
 0x13e PF: > { %s13_s16 = sadd.s32 1, %s1250_s16   ;;  %s1441_s12 = smov %s1238_s13 }
 0x13f   : > { %p10_p12 = scmp.ge.s32.totalorder %s13_s16, 4   ;;  %s1442_s13 = smov %s1308_s20 }
 0x140   : > { %s1443_s14 = smov %s1246_s15  ;;  %s1444_s15 = smov %s1446_s17 }
 0x141   :  { %12 = sbr.rel (!%p10_p12) target bundleno = 3 (0x3), region = 104 }

// kernel: _lambda_.19
= control target key start
LH: loop header
LB: loop body
LE: loop exit
PB: predicated region body
PF: predicated region fallthrough
CT: control target
= control target key end

     0   :  { %v210_v0 = vmov 0.0   ;;  %vm211_vm0 = vmmov 0   ;;  %s268_s1 = inlined_call_operand.vmem [shape: bf16[128,128], index: 1, kind: input, shape index: {}]   ;;  %s269_s0 = inlined_call_operand.vmem [shape: bf16[16,128], index: 0, kind: input, shape index: {}]   ;;  %s270_s2 = inlined_call_operand.vmem [shape: f32[1,128], index: 2, kind: input, shape index: {}]   ;;  %s271_s3 = inlined_call_operand.vmem [shape: f32[16,128], index: 3, kind: output, shape index: {}]  }
   0x1   :  { %179 = vmatprep.subr.bf16.mxu0 %v210_v0  ;;  %v201_v1 = vld [vmem:[%s268_s1 + $0x38] sm:$0xff]   ;;  %195 = vmatprep.mubr.msk.bf16.mxu0 %vm211_vm0, %v210_v0  ;;  %v202_v2 = vld [vmem:[%s268_s1 + $0x30] sm:$0xff]   ;;  %v203_v3 = vld [vmem:[%s268_s1 + $0x28] sm:$0xff]  }
   0x2   :  { %180 = vmatpush3.bf16.msra.mxu0 %v201_v1  ;;  %v204_v4 = vld [vmem:[%s268_s1 + $0x20] sm:$0xff]   ;;  %v205_v5 = vld [vmem:[%s268_s1 + $0x18] sm:$0xff]   ;;  %v206_v6 = vld [vmem:[%s268_s1 + $0x10] sm:$0xff]  }
   0x3   :  { %181 = vmatprep.subr.bf16.mxu0 %v210_v0  ;;  %v207_v7 = vld [vmem:[%s268_s1 + $0x8] sm:$0xff]   ;;  %v208_v8 = vld [vmem:[%s268_s1] sm:$0xff]  }
   0x4   :  { %v209_v9 = vld [vmem:[%s269_s0] sm:$0xff]  }
   0x5   :  { %v169_v10 = vld [vmem:[%s270_s2] ss:$0 sm:$0xff] }
   0x6   :  { %182 = vmatpush3.bf16.msra.mxu0 %v202_v2 }
   0x7   :  { %183 = vmatprep.subr.bf16.mxu0 %v210_v0 }
   0xa   :  { %184 = vmatpush3.bf16.msra.mxu0 %v203_v3 }
   0xb   :  { %185 = vmatprep.subr.bf16.mxu0 %v210_v0 }
   0xe   :  { %186 = vmatpush3.bf16.msra.mxu0 %v204_v4 }
   0xf   :  { %187 = vmatprep.subr.bf16.mxu0 %v210_v0 }
  0x12   :  { %188 = vmatpush3.bf16.msra.mxu0 %v205_v5 }
  0x13   :  { %189 = vmatprep.subr.bf16.mxu0 %v210_v0 }
  0x16   :  { %190 = vmatpush3.bf16.msra.mxu0 %v206_v6 }
  0x17   :  { %191 = vmatprep.subr.bf16.mxu0 %v210_v0 }
  0x1a   :  { %192 = vmatpush3.bf16.msra.mxu0 %v207_v7 }
  0x1b   :  { %193 = vmatprep.subr.bf16.mxu0 %v210_v0 }
  0x1e   :  { %194 = vmatpush3.bf16.msra.mxu0 %v208_v8 }
  0x21   :  { %196 = vmatmul.mubr.bf16.vlgmr.msra.gmra.mxu0 %v209_v9 }
  0xe1   :  { %v129_v11 = vpop.f32.mrf.mxu0 }
  0xe2   :  { %v152_v12 = vadd.f32 %v169_v10, %v129_v11 }
  0xe3   :  { %v197_v13 = vpop.f32.mrf.mxu0 }
  0xe4   :  { %154 = vst [vmem:[%s271_s3] sm:$0xff] %v152_v12 }
  0xe5   :  { %v132_v14 = vpop.f32.mrf.mxu0 }
  0xe6   :  { %v153_v15 = vadd.f32 %v169_v10, %v132_v14 }
  0xe7   :  { %v198_v16 = vpop.f32.mrf.mxu0 }
  0xe8   :  { %155 = vst [vmem:[%s271_s3 + $0x8] sm:$0xff] %v153_v15 }

</bundles_post_ra>
